<compile_context>
chip_gen: v7x
topology: tpu7x:2x2x1
jax: 0.10.0
libtpu: 0.0.40
codegen_flags: <defaults>
</compile_context>

<pallas_src>
import functools

import jax
import jax.numpy as jnp
from jax.experimental import pallas as pl
from jax.experimental.pallas import tpu as pltpu


def _round_up(x, m):
    return (x + m - 1) // m * m


def _pick_time_chunk(T, max_tc=8):
    """Largest divisor of T that is <= max_tc (no time padding allowed)."""
    for d in range(min(T, max_tc), 0, -1):
        if T % d == 0:
            return d
    return 1


# ----------------------------------------------------------------------------
# Fused kernel: all LSTM layers + FC head, one (batch_chunk, time_chunk) grid.
# ----------------------------------------------------------------------------
def _lstm_chunk_kernel(*refs, num_layers, hidden_dim, time_chunk, batch_chunk):
    H = hidden_dim
    Tc = time_chunk
    Bc = batch_chunk
    L = num_layers

    x_ref = refs[0]
    layer_refs = [(refs[1 + 3 * l], refs[2 + 3 * l], refs[3 + 3 * l])
                  for l in range(L)]
    wfc_ref = refs[1 + 3 * L]
    bfc_ref = refs[2 + 3 * L]
    out_ref = refs[3 + 3 * L]
    gates_sc = refs[4 + 3 * L]
    h_refs = [refs[5 + 3 * L + l] for l in range(L)]
    c_refs = [refs[5 + 3 * L + L + l] for l in range(L)]

    t = pl.program_id(1)
    n_t = pl.num_programs(1)

    # Fresh (h, c) = 0 at the start of every sequence (first time chunk).
    @pl.when(t == 0)
    def _():
        for l in range(L):
            h_refs[l][...] = jnp.zeros_like(h_refs[l])
            c_refs[l][...] = jnp.zeros_like(c_refs[l])

    # Lane mask: sigmoid on (i, f, o) columns, tanh on (g) columns. Hoisted so
    # the broadcast is materialized once per grid step, not per unrolled step.
    sig_mask = jax.lax.broadcasted_iota(jnp.int32, (Bc, 4 * H), 1) < 3 * H

    # Layer-0 input projection for the whole time chunk: one big MXU matmul
    # into the gate slab (re-used in place by deeper layers).
    wih0, _, b0 = layer_refs[0]
    gates_sc[...] = (jnp.dot(x_ref[0], wih0[...],
                             preferred_element_type=jnp.float32) + b0[...])

    for l in range(L):
        _, whh_ref, _ = layer_refs[l]
        mm_dtype = whh_ref.dtype
        write_next = l < L - 1
        if write_next:
            wih_next, _, b_next = layer_refs[l + 1]

        h = h_refs[l][...]
        c = c_refs[l][...]
        # Fully unrolled recurrence over the (small, static) time chunk.
        for ti in range(Tc):
            row = ti * Bc
            # whh_ref is read per use (not hoisted into a value) so large H
            # does not blow up the vreg live set inside the hot loop.
            g = (gates_sc[pl.ds(row, Bc), :]
                 + jnp.dot(h.astype(mm_dtype), whh_ref[...],
                           preferred_element_type=jnp.float32))
            # Full 4H-wide nonlinearity + lane-mask blend (EUP has slack); only
            # the unavoidable H-wide extracts for the c/h update remain.
            act = jnp.where(sig_mask, jax.nn.sigmoid(g), jnp.tanh(g))
            i_g = act[:, 0 * H:1 * H]
            f_g = act[:, 1 * H:2 * H]
            o_g = act[:, 2 * H:3 * H]
            g_g = act[:, 3 * H:4 * H]
            c = f_g * c + i_g * g_g
            h = o_g * jnp.tanh(c)
            if write_next:
                # Fuse the next layer's input projection into this step: a
                # lane-dense 4H-wide in-place write to the gate slab (replaces
                # the masked H-wide hseq store + separate big matmul).
                gates_sc[pl.ds(row, Bc), :] = (
                    jnp.dot(h.astype(mm_dtype), wih_next[...],
                            preferred_element_type=jnp.float32) + b_next[...])
        h_refs[l][...] = h
        c_refs[l][...] = c
        # NOTE: PyTorch applies inter-layer dropout only in training mode;
        # eval semantics => identity here.

    # FC head on the final hidden state of the last layer (lstm_out[:, -1, :]).
    # TODO(synk): nn.Dropout before the FC is stochastic in training mode;
    #             eval-mode identity is implemented.
    @pl.when(t == n_t - 1)
    def _():
        h_last = h_refs[L - 1][...]
        out_ref[...] = (jnp.dot(h_last.astype(wfc_ref.dtype), wfc_ref[...],
                                preferred_element_type=jnp.float32)
                        + bfc_ref[...]).astype(out_ref.dtype)


# ----------------------------------------------------------------------------
# Wrapper
# ----------------------------------------------------------------------------
@functools.partial(jax.jit, static_argnames=("use_bf16",))
def classical_lstm_forward(params, x_btf, use_bf16=False):
    """x_btf: (B, T, F) batch-first, like the PyTorch module. Returns (B, O)."""
    layers = params["layers"]
    num_layers = len(layers)
    B, T, F = x_btf.shape
    H = layers[0]["w_hh_t"].shape[0]
    O = params["w_fc_t"].shape[1]

    mm_dtype = jnp.bfloat16 if use_bf16 else jnp.float32

    # Batch: pad to the f32 sublane tile, split into per-core chunks (parallel
    # grid axis -> both TensorCores on v7x; also bounds per-step vreg live set).
    Bc = min(_round_up(max(B, 8), 8), 256)
    Bp = _round_up(max(B, 8), Bc)
    nB = Bp // Bc
    # Time: chunked grid axis bounds the VMEM gate slab and pipelines the x DMA.
    Tc = _pick_time_chunk(T, max_tc=8)
    nT = T // Tc

    # (B, T, F) -> (nB, T*Bc, F); within each batch chunk rows are time-major.
    x = jnp.transpose(x_btf, (1, 0, 2)).astype(mm_dtype)              # (T, B, F)
    x = jnp.pad(x, ((0, 0), (0, Bp - B), (0, 0)))                     # (T, Bp, F)
    x = x.reshape(T, nB, Bc, F).transpose(1, 0, 2, 3).reshape(nB, T * Bc, F)

    kernel = functools.partial(_lstm_chunk_kernel, num_layers=num_layers,
                               hidden_dim=H, time_chunk=Tc, batch_chunk=Bc)

    inputs = [x]
    in_specs = [pl.BlockSpec((1, Tc * Bc, F), lambda b, t: (b, t, 0))]
    for lp in layers:
        in_dim = lp["w_ih_t"].shape[0]
        inputs += [lp["w_ih_t"].astype(mm_dtype),
                   lp["w_hh_t"].astype(mm_dtype),
                   lp["bias"]]
        in_specs += [
            pl.BlockSpec((in_dim, 4 * H), lambda b, t: (0, 0)),
            pl.BlockSpec((H, 4 * H), lambda b, t: (0, 0)),
            pl.BlockSpec((1, 4 * H), lambda b, t: (0, 0)),
        ]
    inputs += [params["w_fc_t"].astype(mm_dtype), params["b_fc"]]
    in_specs += [pl.BlockSpec((H, O), lambda b, t: (0, 0)),
                 pl.BlockSpec((1, O), lambda b, t: (0, 0))]

    scratch_shapes = [pltpu.VMEM((Tc * Bc, 4 * H), jnp.float32)]          # gates
    scratch_shapes += [pltpu.VMEM((Bc, H), jnp.float32)
                       for _ in range(num_layers)]                        # h carry
    scratch_shapes += [pltpu.VMEM((Bc, H), jnp.float32)
                       for _ in range(num_layers)]                        # c carry

    # Explicit VMEM budget from the actual footprint (double-buffered inputs).
    isz = jnp.dtype(mm_dtype).itemsize
    w_bytes = sum((lp["w_ih_t"].shape[0] + H) * 4 * H * isz + 4 * H * 4
                  for lp in layers) + H * O * isz + O * 4
    vmem_bytes = (2 * Tc * Bc * F * isz + 2 * w_bytes + 2 * Bc * O * 4
                  + Tc * Bc * 4 * H * 4 + 2 * num_layers * Bc * H * 4)
    vmem_limit = int(min(128 << 20, max(vmem_bytes + (2 << 20), 16 << 20)))

    out = pl.pallas_call(
        kernel,
        out_shape=jax.ShapeDtypeStruct((Bp, O), jnp.float32),
        grid=(nB, nT),
        in_specs=in_specs,
        out_specs=pl.BlockSpec((Bc, O), lambda b, t: (b, 0)),
        scratch_shapes=scratch_shapes,
        compiler_params=pltpu.CompilerParams(
            dimension_semantics=("parallel", "arbitrary"),
            vmem_limit_bytes=vmem_limit),
    )(*inputs)
    return out[:B]


# ----------------------------------------------------------------------------
# Parameters (PyTorch layout) + conversion to kernel layout
# ----------------------------------------------------------------------------
def init_raw_params(key, feature_dim, hidden_dim, num_layers, output_dim):
    """PyTorch-style uniform(-1/sqrt(H), 1/sqrt(H)) init, PyTorch layouts."""
    bound = 1.0 / (hidden_dim ** 0.5)
    raw = {"layers": []}
    for layer in range(num_layers):
        in_dim = feature_dim if layer == 0 else hidden_dim
        key, k1, k2, k3, k4 = jax.random.split(key, 5)
        raw["layers"].append({
            "w_ih": jax.random.uniform(k1, (4 * hidden_dim, in_dim), jnp.float32,
                                       -bound, bound),
            "w_hh": jax.random.uniform(k2, (4 * hidden_dim, hidden_dim),
                                       jnp.float32, -bound, bound),
            "b_ih": jax.random.uniform(k3, (4 * hidden_dim,), jnp.float32,
                                       -bound, bound),
            "b_hh": jax.random.uniform(k4, (4 * hidden_dim,), jnp.float32,
                                       -bound, bound),
        })
    key, k5, k6 = jax.random.split(key, 3)
    raw["w_fc"] = jax.random.uniform(k5, (output_dim, hidden_dim), jnp.float32,
                                     -bound, bound)
    raw["b_fc"] = jax.random.uniform(k6, (output_dim,), jnp.float32, -bound, bound)
    return raw


def prepare_kernel_params(raw):
    """Transpose weights, permute gate columns (i,f,g,o)->(i,f,o,g), fold biases."""
    params = {"layers": []}
    for lp in raw["layers"]:
        H = lp["w_hh"].shape[1]
        perm = jnp.concatenate([jnp.arange(0, H), jnp.arange(H, 2 * H),
                                jnp.arange(3 * H, 4 * H), jnp.arange(2 * H, 3 * H)])
        params["layers"].append({
            "w_ih_t": lp["w_ih"].T[:, perm],                       # (in, 4H)
            "w_hh_t": lp["w_hh"].T[:, perm],                       # (H, 4H)
            "bias": (lp["b_ih"] + lp["b_hh"])[perm][None, :],      # (1, 4H)
        })
    params["w_fc_t"] = raw["w_fc"].T                               # (H, O)
    params["b_fc"] = raw["b_fc"][None, :]                          # (1, O)
    return params


# ----------------------------------------------------------------------------
# Pure-JAX reference (PyTorch nn.LSTM eval semantics) for validation
# ----------------------------------------------------------------------------
def reference_forward(raw, x_btf):
    B, T, F = x_btf.shape
    seq = jnp.transpose(x_btf, (1, 0, 2)).astype(jnp.float32)      # (T, B, F)
    for lp in raw["layers"]:
        w_ih, w_hh = lp["w_ih"], lp["w_hh"]
        b = lp["b_ih"] + lp["b_hh"]
        H = w_hh.shape[1]

        def step(carry, x_t, w_ih=w_ih, w_hh=w_hh, b=b, H=H):
            h, c = carry
            g = x_t @ w_ih.T + h @ w_hh.T + b
            i = jax.nn.sigmoid(g[:, :H])
            f = jax.nn.sigmoid(g[:, H:2 * H])
            gg = jnp.tanh(g[:, 2 * H:3 * H])
            o = jax.nn.sigmoid(g[:, 3 * H:])
            c = f * c + i * gg
            h = o * jnp.tanh(c)
            return (h, c), h

        init = (jnp.zeros((B, H), jnp.float32), jnp.zeros((B, H), jnp.float32))
        _, seq = jax.lax.scan(step, init, seq)
    last = seq[-1]
    return last @ raw["w_fc"].T + raw["b_fc"]


if __name__ == "__main__":
    B, T = 4, 16                     # T=16 with Tc=8 exercises the chunked grid
    feature_dim, hidden_dim, num_layers, output_dim = 16, 32, 2, 8

    key = jax.random.PRNGKey(0)
    key, xk = jax.random.split(key)
    x = jax.random.normal(xk, (B, T, feature_dim), jnp.float32)

    raw = init_raw_params(key, feature_dim, hidden_dim, num_layers, output_dim)
    params = prepare_kernel_params(raw)
    ref = reference_forward(raw, x)

    # f32 path (matches the PyTorch eval-mode module).
    logits = classical_lstm_forward(params, x, use_bf16=False)
    jax.block_until_ready(logits)
    assert logits.shape == (B, output_dim)
    assert bool(jnp.all(jnp.isfinite(logits)))
    err = float(jnp.max(jnp.abs(logits - ref)))
    assert err < 2e-3, f"f32 max abs error vs reference: {err}"

    # bf16 MXU-operand path (recommended on v6e/v7x); gates/carries/FC acc in f32.
    logits_bf16 = classical_lstm_forward(params, x, use_bf16=True)
    jax.block_until_ready(logits_bf16)
    err_bf16 = float(jnp.max(jnp.abs(logits_bf16 - ref)))
    assert err_bf16 < 5e-2, f"bf16 max abs error vs reference: {err_bf16}"

    print("KERNEL_OK")
</pallas_src>

<mosaic_0001>
module attributes {stable_mosaic.version = 11 : i64} {
  func.func @_lstm_chunk_kernel(%arg0: i32, %arg1: i32, %arg2: memref<1x64x16xf32, #tpu.memory_space<vmem>>, %arg3: memref<16x128xf32, #tpu.memory_space<vmem>>, %arg4: memref<32x128xf32, #tpu.memory_space<vmem>>, %arg5: memref<1x128xf32, #tpu.memory_space<vmem>>, %arg6: memref<32x128xf32, #tpu.memory_space<vmem>>, %arg7: memref<32x128xf32, #tpu.memory_space<vmem>>, %arg8: memref<1x128xf32, #tpu.memory_space<vmem>>, %arg9: memref<32x8xf32, #tpu.memory_space<vmem>>, %arg10: memref<1x8xf32, #tpu.memory_space<vmem>>, %arg11: memref<8x8xf32, #tpu.memory_space<vmem>>, %arg12: memref<64x128xf32, #tpu.memory_space<vmem>>, %arg13: memref<8x32xf32, #tpu.memory_space<vmem>>, %arg14: memref<8x32xf32, #tpu.memory_space<vmem>>, %arg15: memref<8x32xf32, #tpu.memory_space<vmem>>, %arg16: memref<8x32xf32, #tpu.memory_space<vmem>>) attributes {dimension_semantics = [#tpu.dimension_semantics<parallel>, #tpu.dimension_semantics<arbitrary>], iteration_bounds = array<i64: 1, 2>, scalar_prefetch = 0 : i64, scratch_operands = 5 : i64, tpu.core_type = #tpu.core_type<tc>, window_params = [{transform_indices = @transform_0, window_bounds = array<i64: 1, 64, 16>}, {pipeline_mode = #tpu.pipeline_mode<synchronous>, transform_indices = @transform_1, window_bounds = array<i64: 16, 128>}, {pipeline_mode = #tpu.pipeline_mode<synchronous>, transform_indices = @transform_2, window_bounds = array<i64: 32, 128>}, {pipeline_mode = #tpu.pipeline_mode<synchronous>, transform_indices = @transform_3, window_bounds = array<i64: 1, 128>}, {pipeline_mode = #tpu.pipeline_mode<synchronous>, transform_indices = @transform_4, window_bounds = array<i64: 32, 128>}, {pipeline_mode = #tpu.pipeline_mode<synchronous>, transform_indices = @transform_5, window_bounds = array<i64: 32, 128>}, {pipeline_mode = #tpu.pipeline_mode<synchronous>, transform_indices = @transform_6, window_bounds = array<i64: 1, 128>}, {pipeline_mode = #tpu.pipeline_mode<synchronous>, transform_indices = @transform_7, window_bounds = array<i64: 32, 8>}, {pipeline_mode = #tpu.pipeline_mode<synchronous>, transform_indices = @transform_8, window_bounds = array<i64: 1, 8>}, {transform_indices = @transform_9, window_bounds = array<i64: 8, 8>}]} {
    %c0_i32 = arith.constant 0 : i32
    %0 = arith.cmpi eq, %arg1, %c0_i32 : i32
    %1 = arith.extui %0 : i1 to i32
    %c0_i32_0 = arith.constant 0 : i32
    %2 = arith.cmpi ne, %1, %c0_i32_0 : i32
    scf.if %2 {
      %cst_171 = arith.constant 0.000000e+00 : f32
      %393 = vector.broadcast %cst_171 : f32 to vector<8x32xf32>
      %c0_172 = arith.constant 0 : index
      %c0_173 = arith.constant 0 : index
      %394 = vector.load %arg13[%c0_172, %c0_173] : memref<8x32xf32, #tpu.memory_space<vmem>>, vector<8x32xf32>
      tpu.vector_store %arg13[%c0_172, %c0_173], %393 {strides = array<i32>} : memref<8x32xf32, #tpu.memory_space<vmem>>, vector<8x32xf32>,
      %cst_174 = arith.constant 0.000000e+00 : f32
      %395 = vector.broadcast %cst_174 : f32 to vector<8x32xf32>
      %c0_175 = arith.constant 0 : index
      %c0_176 = arith.constant 0 : index
      %396 = vector.load %arg15[%c0_175, %c0_176] : memref<8x32xf32, #tpu.memory_space<vmem>>, vector<8x32xf32>
      tpu.vector_store %arg15[%c0_175, %c0_176], %395 {strides = array<i32>} : memref<8x32xf32, #tpu.memory_space<vmem>>, vector<8x32xf32>,
      %cst_177 = arith.constant 0.000000e+00 : f32
      %397 = vector.broadcast %cst_177 : f32 to vector<8x32xf32>
      %c0_178 = arith.constant 0 : index
      %c0_179 = arith.constant 0 : index
      %398 = vector.load %arg14[%c0_178, %c0_179] : memref<8x32xf32, #tpu.memory_space<vmem>>, vector<8x32xf32>
      tpu.vector_store %arg14[%c0_178, %c0_179], %397 {strides = array<i32>} : memref<8x32xf32, #tpu.memory_space<vmem>>, vector<8x32xf32>,
      %cst_180 = arith.constant 0.000000e+00 : f32
      %399 = vector.broadcast %cst_180 : f32 to vector<8x32xf32>
      %c0_181 = arith.constant 0 : index
      %c0_182 = arith.constant 0 : index
      %400 = vector.load %arg16[%c0_181, %c0_182] : memref<8x32xf32, #tpu.memory_space<vmem>>, vector<8x32xf32>
      tpu.vector_store %arg16[%c0_181, %c0_182], %399 {strides = array<i32>} : memref<8x32xf32, #tpu.memory_space<vmem>>, vector<8x32xf32>,
    } else {
    }
    %3 = tpu.iota {dimensions = array<i32: 1>} : vector<8x128xi32>
    %c96_i32 = arith.constant 96 : i32
    %4 = vector.broadcast %c96_i32 : i32 to vector<8x128xi32>
    %5 = arith.cmpi slt, %3, %4 : vector<8x128xi32>
    %c0 = arith.constant 0 : index
    %c0_1 = arith.constant 0 : index
    %c0_2 = arith.constant 0 : index
    %6 = vector.load %arg2[%c0, %c0_1, %c0_2] : memref<1x64x16xf32, #tpu.memory_space<vmem>>, vector<1x64x16xf32>
    %7 = vector.shape_cast %6 : vector<1x64x16xf32> to vector<64x16xf32>
    %c0_3 = arith.constant 0 : index
    %c0_4 = arith.constant 0 : index
    %8 = vector.load %arg3[%c0_3, %c0_4] : memref<16x128xf32, #tpu.memory_space<vmem>>, vector<16x128xf32>
    %cst = arith.constant dense<0.000000e+00> : vector<64x128xf32>
    %9 = tpu.matmul %7, %8, %cst {dimension_numbers = #tpu.dot_dimension_numbers<[1], [0], [0], [1], [0, 0, 1, 1], [], []>} : vector<64x16xf32>, vector<16x128xf32>, vector<64x128xf32> -> vector<64x128xf32>
    %c0_5 = arith.constant 0 : index
    %c0_6 = arith.constant 0 : index
    %10 = vector.load %arg5[%c0_5, %c0_6] : memref<1x128xf32, #tpu.memory_space<vmem>>, vector<1x128xf32>
    %11 = vector.broadcast %10 : vector<1x128xf32> to vector<64x128xf32>
    %12 = arith.addf %9, %11 : vector<64x128xf32>
    %c0_7 = arith.constant 0 : index
    %c0_8 = arith.constant 0 : index
    %13 = vector.load %arg12[%c0_7, %c0_8] : memref<64x128xf32, #tpu.memory_space<vmem>>, vector<64x128xf32>
    tpu.vector_store %arg12[%c0_7, %c0_8], %12 {strides = array<i32>} : memref<64x128xf32, #tpu.memory_space<vmem>>, vector<64x128xf32>,
    %c0_9 = arith.constant 0 : index
    %c0_10 = arith.constant 0 : index
    %14 = vector.load %arg13[%c0_9, %c0_10] : memref<8x32xf32, #tpu.memory_space<vmem>>, vector<8x32xf32>
    %c0_11 = arith.constant 0 : index
    %c0_12 = arith.constant 0 : index
    %15 = vector.load %arg15[%c0_11, %c0_12] : memref<8x32xf32, #tpu.memory_space<vmem>>, vector<8x32xf32>
    %c0_13 = arith.constant 0 : index
    %c0_14 = arith.constant 0 : index
    %16 = vector.load %arg12[%c0_13, %c0_14] : memref<64x128xf32, #tpu.memory_space<vmem>>, vector<8x128xf32>
    %c0_15 = arith.constant 0 : index
    %c0_16 = arith.constant 0 : index
    %17 = vector.load %arg4[%c0_15, %c0_16] : memref<32x128xf32, #tpu.memory_space<vmem>>, vector<32x128xf32>
    %cst_17 = arith.constant dense<0.000000e+00> : vector<8x128xf32>
    %18 = tpu.matmul %14, %17, %cst_17 {dimension_numbers = #tpu.dot_dimension_numbers<[1], [0], [0], [1], [0, 0, 1, 1], [], []>} : vector<8x32xf32>, vector<32x128xf32>, vector<8x128xf32> -> vector<8x128xf32>
    %19 = arith.addf %16, %18 : vector<8x128xf32>
    %20 = arith.negf %19 : vector<8x128xf32>
    %21 = math.exp %20 : vector<8x128xf32>
    %cst_18 = arith.constant 1.000000e+00 : f32
    %22 = vector.broadcast %cst_18 : f32 to vector<8x128xf32>
    %23 = arith.addf %22, %21 : vector<8x128xf32>
    %24 = arith.divf %22, %23 : vector<8x128xf32>
    %25 = math.tanh %19 : vector<8x128xf32>
    %26 = arith.select %5, %24, %25 : vector<8x128xi1>, vector<8x128xf32>
    %27 = vector.extract_strided_slice %26 {offsets = [0, 0], sizes = [8, 32], strides = [1, 1]} : vector<8x128xf32> to vector<8x32xf32>
    %28 = vector.extract_strided_slice %26 {offsets = [0, 32], sizes = [8, 32], strides = [1, 1]} : vector<8x128xf32> to vector<8x32xf32>
    %29 = vector.extract_strided_slice %26 {offsets = [0, 64], sizes = [8, 32], strides = [1, 1]} : vector<8x128xf32> to vector<8x32xf32>
    %30 = vector.extract_strided_slice %26 {offsets = [0, 96], sizes = [8, 32], strides = [1, 1]} : vector<8x128xf32> to vector<8x32xf32>
    %31 = arith.mulf %28, %15 : vector<8x32xf32>
    %32 = arith.mulf %27, %30 : vector<8x32xf32>
    %33 = arith.addf %31, %32 : vector<8x32xf32>
    %34 = math.tanh %33 : vector<8x32xf32>
    %35 = arith.mulf %29, %34 : vector<8x32xf32>
    %c0_19 = arith.constant 0 : index
    %c0_20 = arith.constant 0 : index
    %36 = vector.load %arg6[%c0_19, %c0_20] : memref<32x128xf32, #tpu.memory_space<vmem>>, vector<32x128xf32>
    %cst_21 = arith.constant dense<0.000000e+00> : vector<8x128xf32>
    %37 = tpu.matmul %35, %36, %cst_21 {dimension_numbers = #tpu.dot_dimension_numbers<[1], [0], [0], [1], [0, 0, 1, 1], [], []>} : vector<8x32xf32>, vector<32x128xf32>, vector<8x128xf32> -> vector<8x128xf32>
    %c0_22 = arith.constant 0 : index
    %c0_23 = arith.constant 0 : index
    %38 = vector.load %arg8[%c0_22, %c0_23] : memref<1x128xf32, #tpu.memory_space<vmem>>, vector<1x128xf32>
    %39 = vector.broadcast %38 : vector<1x128xf32> to vector<8x128xf32>
    %40 = arith.addf %37, %39 : vector<8x128xf32>
    %c0_24 = arith.constant 0 : index
    %c0_25 = arith.constant 0 : index
    %41 = vector.load %arg12[%c0_24, %c0_25] : memref<64x128xf32, #tpu.memory_space<vmem>>, vector<8x128xf32>
    tpu.vector_store %arg12[%c0_24, %c0_25], %40 {strides = array<i32>} : memref<64x128xf32, #tpu.memory_space<vmem>>, vector<8x128xf32>,
    %c8 = arith.constant 8 : index
    %c0_26 = arith.constant 0 : index
    %42 = vector.load %arg12[%c8, %c0_26] : memref<64x128xf32, #tpu.memory_space<vmem>>, vector<8x128xf32>
    %c0_27 = arith.constant 0 : index
    %c0_28 = arith.constant 0 : index
    %43 = vector.load %arg4[%c0_27, %c0_28] : memref<32x128xf32, #tpu.memory_space<vmem>>, vector<32x128xf32>
    %cst_29 = arith.constant dense<0.000000e+00> : vector<8x128xf32>
    %44 = tpu.matmul %35, %43, %cst_29 {dimension_numbers = #tpu.dot_dimension_numbers<[1], [0], [0], [1], [0, 0, 1, 1], [], []>} : vector<8x32xf32>, vector<32x128xf32>, vector<8x128xf32> -> vector<8x128xf32>
    %45 = arith.addf %42, %44 : vector<8x128xf32>
    %46 = arith.negf %45 : vector<8x128xf32>
    %47 = math.exp %46 : vector<8x128xf32>
    %cst_30 = arith.constant 1.000000e+00 : f32
    %48 = vector.broadcast %cst_30 : f32 to vector<8x128xf32>
    %49 = arith.addf %48, %47 : vector<8x128xf32>
    %50 = arith.divf %48, %49 : vector<8x128xf32>
    %51 = math.tanh %45 : vector<8x128xf32>
    %52 = arith.select %5, %50, %51 : vector<8x128xi1>, vector<8x128xf32>
    %53 = vector.extract_strided_slice %52 {offsets = [0, 0], sizes = [8, 32], strides = [1, 1]} : vector<8x128xf32> to vector<8x32xf32>
    %54 = vector.extract_strided_slice %52 {offsets = [0, 32], sizes = [8, 32], strides = [1, 1]} : vector<8x128xf32> to vector<8x32xf32>
    %55 = vector.extract_strided_slice %52 {offsets = [0, 64], sizes = [8, 32], strides = [1, 1]} : vector<8x128xf32> to vector<8x32xf32>
    %56 = vector.extract_strided_slice %52 {offsets = [0, 96], sizes = [8, 32], strides = [1, 1]} : vector<8x128xf32> to vector<8x32xf32>
    %57 = arith.mulf %54, %33 : vector<8x32xf32>
    %58 = arith.mulf %53, %56 : vector<8x32xf32>
    %59 = arith.addf %57, %58 : vector<8x32xf32>
    %60 = math.tanh %59 : vector<8x32xf32>
    %61 = arith.mulf %55, %60 : vector<8x32xf32>
    %c0_31 = arith.constant 0 : index
    %c0_32 = arith.constant 0 : index
    %62 = vector.load %arg6[%c0_31, %c0_32] : memref<32x128xf32, #tpu.memory_space<vmem>>, vector<32x128xf32>
    %cst_33 = arith.constant dense<0.000000e+00> : vector<8x128xf32>
    %63 = tpu.matmul %61, %62, %cst_33 {dimension_numbers = #tpu.dot_dimension_numbers<[1], [0], [0], [1], [0, 0, 1, 1], [], []>} : vector<8x32xf32>, vector<32x128xf32>, vector<8x128xf32> -> vector<8x128xf32>
    %c0_34 = arith.constant 0 : index
    %c0_35 = arith.constant 0 : index
    %64 = vector.load %arg8[%c0_34, %c0_35] : memref<1x128xf32, #tpu.memory_space<vmem>>, vector<1x128xf32>
    %65 = vector.broadcast %64 : vector<1x128xf32> to vector<8x128xf32>
    %66 = arith.addf %63, %65 : vector<8x128xf32>
    %c8_36 = arith.constant 8 : index
    %c0_37 = arith.constant 0 : index
    %67 = vector.load %arg12[%c8_36, %c0_37] : memref<64x128xf32, #tpu.memory_space<vmem>>, vector<8x128xf32>
    tpu.vector_store %arg12[%c8_36, %c0_37], %66 {strides = array<i32>} : memref<64x128xf32, #tpu.memory_space<vmem>>, vector<8x128xf32>,
    %c16 = arith.constant 16 : index
    %c0_38 = arith.constant 0 : index
    %68 = vector.load %arg12[%c16, %c0_38] : memref<64x128xf32, #tpu.memory_space<vmem>>, vector<8x128xf32>
    %c0_39 = arith.constant 0 : index
    %c0_40 = arith.constant 0 : index
    %69 = vector.load %arg4[%c0_39, %c0_40] : memref<32x128xf32, #tpu.memory_space<vmem>>, vector<32x128xf32>
    %cst_41 = arith.constant dense<0.000000e+00> : vector<8x128xf32>
    %70 = tpu.matmul %61, %69, %cst_41 {dimension_numbers = #tpu.dot_dimension_numbers<[1], [0], [0], [1], [0, 0, 1, 1], [], []>} : vector<8x32xf32>, vector<32x128xf32>, vector<8x128xf32> -> vector<8x128xf32>
    %71 = arith.addf %68, %70 : vector<8x128xf32>
    %72 = arith.negf %71 : vector<8x128xf32>
    %73 = math.exp %72 : vector<8x128xf32>
    %cst_42 = arith.constant 1.000000e+00 : f32
    %74 = vector.broadcast %cst_42 : f32 to vector<8x128xf32>
    %75 = arith.addf %74, %73 : vector<8x128xf32>
    %76 = arith.divf %74, %75 : vector<8x128xf32>
    %77 = math.tanh %71 : vector<8x128xf32>
    %78 = arith.select %5, %76, %77 : vector<8x128xi1>, vector<8x128xf32>
    %79 = vector.extract_strided_slice %78 {offsets = [0, 0], sizes = [8, 32], strides = [1, 1]} : vector<8x128xf32> to vector<8x32xf32>
    %80 = vector.extract_strided_slice %78 {offsets = [0, 32], sizes = [8, 32], strides = [1, 1]} : vector<8x128xf32> to vector<8x32xf32>
    %81 = vector.extract_strided_slice %78 {offsets = [0, 64], sizes = [8, 32], strides = [1, 1]} : vector<8x128xf32> to vector<8x32xf32>
    %82 = vector.extract_strided_slice %78 {offsets = [0, 96], sizes = [8, 32], strides = [1, 1]} : vector<8x128xf32> to vector<8x32xf32>
    %83 = arith.mulf %80, %59 : vector<8x32xf32>
    %84 = arith.mulf %79, %82 : vector<8x32xf32>
    %85 = arith.addf %83, %84 : vector<8x32xf32>
    %86 = math.tanh %85 : vector<8x32xf32>
    %87 = arith.mulf %81, %86 : vector<8x32xf32>
    %c0_43 = arith.constant 0 : index
    %c0_44 = arith.constant 0 : index
    %88 = vector.load %arg6[%c0_43, %c0_44] : memref<32x128xf32, #tpu.memory_space<vmem>>, vector<32x128xf32>
    %cst_45 = arith.constant dense<0.000000e+00> : vector<8x128xf32>
    %89 = tpu.matmul %87, %88, %cst_45 {dimension_numbers = #tpu.dot_dimension_numbers<[1], [0], [0], [1], [0, 0, 1, 1], [], []>} : vector<8x32xf32>, vector<32x128xf32>, vector<8x128xf32> -> vector<8x128xf32>
    %c0_46 = arith.constant 0 : index
    %c0_47 = arith.constant 0 : index
    %90 = vector.load %arg8[%c0_46, %c0_47] : memref<1x128xf32, #tpu.memory_space<vmem>>, vector<1x128xf32>
    %91 = vector.broadcast %90 : vector<1x128xf32> to vector<8x128xf32>
    %92 = arith.addf %89, %91 : vector<8x128xf32>
    %c16_48 = arith.constant 16 : index
    %c0_49 = arith.constant 0 : index
    %93 = vector.load %arg12[%c16_48, %c0_49] : memref<64x128xf32, #tpu.memory_space<vmem>>, vector<8x128xf32>
    tpu.vector_store %arg12[%c16_48, %c0_49], %92 {strides = array<i32>} : memref<64x128xf32, #tpu.memory_space<vmem>>, vector<8x128xf32>,
    %c24 = arith.constant 24 : index
    %c0_50 = arith.constant 0 : index
    %94 = vector.load %arg12[%c24, %c0_50] : memref<64x128xf32, #tpu.memory_space<vmem>>, vector<8x128xf32>
    %c0_51 = arith.constant 0 : index
    %c0_52 = arith.constant 0 : index
    %95 = vector.load %arg4[%c0_51, %c0_52] : memref<32x128xf32, #tpu.memory_space<vmem>>, vector<32x128xf32>
    %cst_53 = arith.constant dense<0.000000e+00> : vector<8x128xf32>
    %96 = tpu.matmul %87, %95, %cst_53 {dimension_numbers = #tpu.dot_dimension_numbers<[1], [0], [0], [1], [0, 0, 1, 1], [], []>} : vector<8x32xf32>, vector<32x128xf32>, vector<8x128xf32> -> vector<8x128xf32>
    %97 = arith.addf %94, %96 : vector<8x128xf32>
    %98 = arith.negf %97 : vector<8x128xf32>
    %99 = math.exp %98 : vector<8x128xf32>
    %cst_54 = arith.constant 1.000000e+00 : f32
    %100 = vector.broadcast %cst_54 : f32 to vector<8x128xf32>
    %101 = arith.addf %100, %99 : vector<8x128xf32>
    %102 = arith.divf %100, %101 : vector<8x128xf32>
    %103 = math.tanh %97 : vector<8x128xf32>
    %104 = arith.select %5, %102, %103 : vector<8x128xi1>, vector<8x128xf32>
    %105 = vector.extract_strided_slice %104 {offsets = [0, 0], sizes = [8, 32], strides = [1, 1]} : vector<8x128xf32> to vector<8x32xf32>
    %106 = vector.extract_strided_slice %104 {offsets = [0, 32], sizes = [8, 32], strides = [1, 1]} : vector<8x128xf32> to vector<8x32xf32>
    %107 = vector.extract_strided_slice %104 {offsets = [0, 64], sizes = [8, 32], strides = [1, 1]} : vector<8x128xf32> to vector<8x32xf32>
    %108 = vector.extract_strided_slice %104 {offsets = [0, 96], sizes = [8, 32], strides = [1, 1]} : vector<8x128xf32> to vector<8x32xf32>
    %109 = arith.mulf %106, %85 : vector<8x32xf32>
    %110 = arith.mulf %105, %108 : vector<8x32xf32>
    %111 = arith.addf %109, %110 : vector<8x32xf32>
    %112 = math.tanh %111 : vector<8x32xf32>
    %113 = arith.mulf %107, %112 : vector<8x32xf32>
    %c0_55 = arith.constant 0 : index
    %c0_56 = arith.constant 0 : index
    %114 = vector.load %arg6[%c0_55, %c0_56] : memref<32x128xf32, #tpu.memory_space<vmem>>, vector<32x128xf32>
    %cst_57 = arith.constant dense<0.000000e+00> : vector<8x128xf32>
    %115 = tpu.matmul %113, %114, %cst_57 {dimension_numbers = #tpu.dot_dimension_numbers<[1], [0], [0], [1], [0, 0, 1, 1], [], []>} : vector<8x32xf32>, vector<32x128xf32>, vector<8x128xf32> -> vector<8x128xf32>
    %c0_58 = arith.constant 0 : index
    %c0_59 = arith.constant 0 : index
    %116 = vector.load %arg8[%c0_58, %c0_59] : memref<1x128xf32, #tpu.memory_space<vmem>>, vector<1x128xf32>
    %117 = vector.broadcast %116 : vector<1x128xf32> to vector<8x128xf32>
    %118 = arith.addf %115, %117 : vector<8x128xf32>
    %c24_60 = arith.constant 24 : index
    %c0_61 = arith.constant 0 : index
    %119 = vector.load %arg12[%c24_60, %c0_61] : memref<64x128xf32, #tpu.memory_space<vmem>>, vector<8x128xf32>
    tpu.vector_store %arg12[%c24_60, %c0_61], %118 {strides = array<i32>} : memref<64x128xf32, #tpu.memory_space<vmem>>, vector<8x128xf32>,
    %c32 = arith.constant 32 : index
    %c0_62 = arith.constant 0 : index
    %120 = vector.load %arg12[%c32, %c0_62] : memref<64x128xf32, #tpu.memory_space<vmem>>, vector<8x128xf32>
    %c0_63 = arith.constant 0 : index
    %c0_64 = arith.constant 0 : index
    %121 = vector.load %arg4[%c0_63, %c0_64] : memref<32x128xf32, #tpu.memory_space<vmem>>, vector<32x128xf32>
    %cst_65 = arith.constant dense<0.000000e+00> : vector<8x128xf32>
    %122 = tpu.matmul %113, %121, %cst_65 {dimension_numbers = #tpu.dot_dimension_numbers<[1], [0], [0], [1], [0, 0, 1, 1], [], []>} : vector<8x32xf32>, vector<32x128xf32>, vector<8x128xf32> -> vector<8x128xf32>
    %123 = arith.addf %120, %122 : vector<8x128xf32>
    %124 = arith.negf %123 : vector<8x128xf32>
    %125 = math.exp %124 : vector<8x128xf32>
    %cst_66 = arith.constant 1.000000e+00 : f32
    %126 = vector.broadcast %cst_66 : f32 to vector<8x128xf32>
    %127 = arith.addf %126, %125 : vector<8x128xf32>
    %128 = arith.divf %126, %127 : vector<8x128xf32>
    %129 = math.tanh %123 : vector<8x128xf32>
    %130 = arith.select %5, %128, %129 : vector<8x128xi1>, vector<8x128xf32>
    %131 = vector.extract_strided_slice %130 {offsets = [0, 0], sizes = [8, 32], strides = [1, 1]} : vector<8x128xf32> to vector<8x32xf32>
    %132 = vector.extract_strided_slice %130 {offsets = [0, 32], sizes = [8, 32], strides = [1, 1]} : vector<8x128xf32> to vector<8x32xf32>
    %133 = vector.extract_strided_slice %130 {offsets = [0, 64], sizes = [8, 32], strides = [1, 1]} : vector<8x128xf32> to vector<8x32xf32>
    %134 = vector.extract_strided_slice %130 {offsets = [0, 96], sizes = [8, 32], strides = [1, 1]} : vector<8x128xf32> to vector<8x32xf32>
    %135 = arith.mulf %132, %111 : vector<8x32xf32>
    %136 = arith.mulf %131, %134 : vector<8x32xf32>
    %137 = arith.addf %135, %136 : vector<8x32xf32>
    %138 = math.tanh %137 : vector<8x32xf32>
    %139 = arith.mulf %133, %138 : vector<8x32xf32>
    %c0_67 = arith.constant 0 : index
    %c0_68 = arith.constant 0 : index
    %140 = vector.load %arg6[%c0_67, %c0_68] : memref<32x128xf32, #tpu.memory_space<vmem>>, vector<32x128xf32>
    %cst_69 = arith.constant dense<0.000000e+00> : vector<8x128xf32>
    %141 = tpu.matmul %139, %140, %cst_69 {dimension_numbers = #tpu.dot_dimension_numbers<[1], [0], [0], [1], [0, 0, 1, 1], [], []>} : vector<8x32xf32>, vector<32x128xf32>, vector<8x128xf32> -> vector<8x128xf32>
    %c0_70 = arith.constant 0 : index
    %c0_71 = arith.constant 0 : index
    %142 = vector.load %arg8[%c0_70, %c0_71] : memref<1x128xf32, #tpu.memory_space<vmem>>, vector<1x128xf32>
    %143 = vector.broadcast %142 : vector<1x128xf32> to vector<8x128xf32>
    %144 = arith.addf %141, %143 : vector<8x128xf32>
    %c32_72 = arith.constant 32 : index
    %c0_73 = arith.constant 0 : index
    %145 = vector.load %arg12[%c32_72, %c0_73] : memref<64x128xf32, #tpu.memory_space<vmem>>, vector<8x128xf32>
    tpu.vector_store %arg12[%c32_72, %c0_73], %144 {strides = array<i32>} : memref<64x128xf32, #tpu.memory_space<vmem>>, vector<8x128xf32>,
    %c40 = arith.constant 40 : index
    %c0_74 = arith.constant 0 : index
    %146 = vector.load %arg12[%c40, %c0_74] : memref<64x128xf32, #tpu.memory_space<vmem>>, vector<8x128xf32>
    %c0_75 = arith.constant 0 : index
    %c0_76 = arith.constant 0 : index
    %147 = vector.load %arg4[%c0_75, %c0_76] : memref<32x128xf32, #tpu.memory_space<vmem>>, vector<32x128xf32>
    %cst_77 = arith.constant dense<0.000000e+00> : vector<8x128xf32>
    %148 = tpu.matmul %139, %147, %cst_77 {dimension_numbers = #tpu.dot_dimension_numbers<[1], [0], [0], [1], [0, 0, 1, 1], [], []>} : vector<8x32xf32>, vector<32x128xf32>, vector<8x128xf32> -> vector<8x128xf32>
    %149 = arith.addf %146, %148 : vector<8x128xf32>
    %150 = arith.negf %149 : vector<8x128xf32>
    %151 = math.exp %150 : vector<8x128xf32>
    %cst_78 = arith.constant 1.000000e+00 : f32
    %152 = vector.broadcast %cst_78 : f32 to vector<8x128xf32>
    %153 = arith.addf %152, %151 : vector<8x128xf32>
    %154 = arith.divf %152, %153 : vector<8x128xf32>
    %155 = math.tanh %149 : vector<8x128xf32>
    %156 = arith.select %5, %154, %155 : vector<8x128xi1>, vector<8x128xf32>
    %157 = vector.extract_strided_slice %156 {offsets = [0, 0], sizes = [8, 32], strides = [1, 1]} : vector<8x128xf32> to vector<8x32xf32>
    %158 = vector.extract_strided_slice %156 {offsets = [0, 32], sizes = [8, 32], strides = [1, 1]} : vector<8x128xf32> to vector<8x32xf32>
    %159 = vector.extract_strided_slice %156 {offsets = [0, 64], sizes = [8, 32], strides = [1, 1]} : vector<8x128xf32> to vector<8x32xf32>
    %160 = vector.extract_strided_slice %156 {offsets = [0, 96], sizes = [8, 32], strides = [1, 1]} : vector<8x128xf32> to vector<8x32xf32>
    %161 = arith.mulf %158, %137 : vector<8x32xf32>
    %162 = arith.mulf %157, %160 : vector<8x32xf32>
    %163 = arith.addf %161, %162 : vector<8x32xf32>
    %164 = math.tanh %163 : vector<8x32xf32>
    %165 = arith.mulf %159, %164 : vector<8x32xf32>
    %c0_79 = arith.constant 0 : index
    %c0_80 = arith.constant 0 : index
    %166 = vector.load %arg6[%c0_79, %c0_80] : memref<32x128xf32, #tpu.memory_space<vmem>>, vector<32x128xf32>
    %cst_81 = arith.constant dense<0.000000e+00> : vector<8x128xf32>
    %167 = tpu.matmul %165, %166, %cst_81 {dimension_numbers = #tpu.dot_dimension_numbers<[1], [0], [0], [1], [0, 0, 1, 1], [], []>} : vector<8x32xf32>, vector<32x128xf32>, vector<8x128xf32> -> vector<8x128xf32>
    %c0_82 = arith.constant 0 : index
    %c0_83 = arith.constant 0 : index
    %168 = vector.load %arg8[%c0_82, %c0_83] : memref<1x128xf32, #tpu.memory_space<vmem>>, vector<1x128xf32>
    %169 = vector.broadcast %168 : vector<1x128xf32> to vector<8x128xf32>
    %170 = arith.addf %167, %169 : vector<8x128xf32>
    %c40_84 = arith.constant 40 : index
    %c0_85 = arith.constant 0 : index
    %171 = vector.load %arg12[%c40_84, %c0_85] : memref<64x128xf32, #tpu.memory_space<vmem>>, vector<8x128xf32>
    tpu.vector_store %arg12[%c40_84, %c0_85], %170 {strides = array<i32>} : memref<64x128xf32, #tpu.memory_space<vmem>>, vector<8x128xf32>,
    %c48 = arith.constant 48 : index
    %c0_86 = arith.constant 0 : index
    %172 = vector.load %arg12[%c48, %c0_86] : memref<64x128xf32, #tpu.memory_space<vmem>>, vector<8x128xf32>
    %c0_87 = arith.constant 0 : index
    %c0_88 = arith.constant 0 : index
    %173 = vector.load %arg4[%c0_87, %c0_88] : memref<32x128xf32, #tpu.memory_space<vmem>>, vector<32x128xf32>
    %cst_89 = arith.constant dense<0.000000e+00> : vector<8x128xf32>
    %174 = tpu.matmul %165, %173, %cst_89 {dimension_numbers = #tpu.dot_dimension_numbers<[1], [0], [0], [1], [0, 0, 1, 1], [], []>} : vector<8x32xf32>, vector<32x128xf32>, vector<8x128xf32> -> vector<8x128xf32>
    %175 = arith.addf %172, %174 : vector<8x128xf32>
    %176 = arith.negf %175 : vector<8x128xf32>
    %177 = math.exp %176 : vector<8x128xf32>
    %cst_90 = arith.constant 1.000000e+00 : f32
    %178 = vector.broadcast %cst_90 : f32 to vector<8x128xf32>
    %179 = arith.addf %178, %177 : vector<8x128xf32>
    %180 = arith.divf %178, %179 : vector<8x128xf32>
    %181 = math.tanh %175 : vector<8x128xf32>
    %182 = arith.select %5, %180, %181 : vector<8x128xi1>, vector<8x128xf32>
    %183 = vector.extract_strided_slice %182 {offsets = [0, 0], sizes = [8, 32], strides = [1, 1]} : vector<8x128xf32> to vector<8x32xf32>
    %184 = vector.extract_strided_slice %182 {offsets = [0, 32], sizes = [8, 32], strides = [1, 1]} : vector<8x128xf32> to vector<8x32xf32>
    %185 = vector.extract_strided_slice %182 {offsets = [0, 64], sizes = [8, 32], strides = [1, 1]} : vector<8x128xf32> to vector<8x32xf32>
    %186 = vector.extract_strided_slice %182 {offsets = [0, 96], sizes = [8, 32], strides = [1, 1]} : vector<8x128xf32> to vector<8x32xf32>
    %187 = arith.mulf %184, %163 : vector<8x32xf32>
    %188 = arith.mulf %183, %186 : vector<8x32xf32>
    %189 = arith.addf %187, %188 : vector<8x32xf32>
    %190 = math.tanh %189 : vector<8x32xf32>
    %191 = arith.mulf %185, %190 : vector<8x32xf32>
    %c0_91 = arith.constant 0 : index
    %c0_92 = arith.constant 0 : index
    %192 = vector.load %arg6[%c0_91, %c0_92] : memref<32x128xf32, #tpu.memory_space<vmem>>, vector<32x128xf32>
    %cst_93 = arith.constant dense<0.000000e+00> : vector<8x128xf32>
    %193 = tpu.matmul %191, %192, %cst_93 {dimension_numbers = #tpu.dot_dimension_numbers<[1], [0], [0], [1], [0, 0, 1, 1], [], []>} : vector<8x32xf32>, vector<32x128xf32>, vector<8x128xf32> -> vector<8x128xf32>
    %c0_94 = arith.constant 0 : index
    %c0_95 = arith.constant 0 : index
    %194 = vector.load %arg8[%c0_94, %c0_95] : memref<1x128xf32, #tpu.memory_space<vmem>>, vector<1x128xf32>
    %195 = vector.broadcast %194 : vector<1x128xf32> to vector<8x128xf32>
    %196 = arith.addf %193, %195 : vector<8x128xf32>
    %c48_96 = arith.constant 48 : index
    %c0_97 = arith.constant 0 : index
    %197 = vector.load %arg12[%c48_96, %c0_97] : memref<64x128xf32, #tpu.memory_space<vmem>>, vector<8x128xf32>
    tpu.vector_store %arg12[%c48_96, %c0_97], %196 {strides = array<i32>} : memref<64x128xf32, #tpu.memory_space<vmem>>, vector<8x128xf32>,
    %c56 = arith.constant 56 : index
    %c0_98 = arith.constant 0 : index
    %198 = vector.load %arg12[%c56, %c0_98] : memref<64x128xf32, #tpu.memory_space<vmem>>, vector<8x128xf32>
    %c0_99 = arith.constant 0 : index
    %c0_100 = arith.constant 0 : index
    %199 = vector.load %arg4[%c0_99, %c0_100] : memref<32x128xf32, #tpu.memory_space<vmem>>, vector<32x128xf32>
    %cst_101 = arith.constant dense<0.000000e+00> : vector<8x128xf32>
    %200 = tpu.matmul %191, %199, %cst_101 {dimension_numbers = #tpu.dot_dimension_numbers<[1], [0], [0], [1], [0, 0, 1, 1], [], []>} : vector<8x32xf32>, vector<32x128xf32>, vector<8x128xf32> -> vector<8x128xf32>
    %201 = arith.addf %198, %200 : vector<8x128xf32>
    %202 = arith.negf %201 : vector<8x128xf32>
    %203 = math.exp %202 : vector<8x128xf32>
    %cst_102 = arith.constant 1.000000e+00 : f32
    %204 = vector.broadcast %cst_102 : f32 to vector<8x128xf32>
    %205 = arith.addf %204, %203 : vector<8x128xf32>
    %206 = arith.divf %204, %205 : vector<8x128xf32>
    %207 = math.tanh %201 : vector<8x128xf32>
    %208 = arith.select %5, %206, %207 : vector<8x128xi1>, vector<8x128xf32>
    %209 = vector.extract_strided_slice %208 {offsets = [0, 0], sizes = [8, 32], strides = [1, 1]} : vector<8x128xf32> to vector<8x32xf32>
    %210 = vector.extract_strided_slice %208 {offsets = [0, 32], sizes = [8, 32], strides = [1, 1]} : vector<8x128xf32> to vector<8x32xf32>
    %211 = vector.extract_strided_slice %208 {offsets = [0, 64], sizes = [8, 32], strides = [1, 1]} : vector<8x128xf32> to vector<8x32xf32>
    %212 = vector.extract_strided_slice %208 {offsets = [0, 96], sizes = [8, 32], strides = [1, 1]} : vector<8x128xf32> to vector<8x32xf32>
    %213 = arith.mulf %210, %189 : vector<8x32xf32>
    %214 = arith.mulf %209, %212 : vector<8x32xf32>
    %215 = arith.addf %213, %214 : vector<8x32xf32>
    %216 = math.tanh %215 : vector<8x32xf32>
    %217 = arith.mulf %211, %216 : vector<8x32xf32>
    %c0_103 = arith.constant 0 : index
    %c0_104 = arith.constant 0 : index
    %218 = vector.load %arg6[%c0_103, %c0_104] : memref<32x128xf32, #tpu.memory_space<vmem>>, vector<32x128xf32>
    %cst_105 = arith.constant dense<0.000000e+00> : vector<8x128xf32>
    %219 = tpu.matmul %217, %218, %cst_105 {dimension_numbers = #tpu.dot_dimension_numbers<[1], [0], [0], [1], [0, 0, 1, 1], [], []>} : vector<8x32xf32>, vector<32x128xf32>, vector<8x128xf32> -> vector<8x128xf32>
    %c0_106 = arith.constant 0 : index
    %c0_107 = arith.constant 0 : index
    %220 = vector.load %arg8[%c0_106, %c0_107] : memref<1x128xf32, #tpu.memory_space<vmem>>, vector<1x128xf32>
    %221 = vector.broadcast %220 : vector<1x128xf32> to vector<8x128xf32>
    %222 = arith.addf %219, %221 : vector<8x128xf32>
    %c56_108 = arith.constant 56 : index
    %c0_109 = arith.constant 0 : index
    %223 = vector.load %arg12[%c56_108, %c0_109] : memref<64x128xf32, #tpu.memory_space<vmem>>, vector<8x128xf32>
    tpu.vector_store %arg12[%c56_108, %c0_109], %222 {strides = array<i32>} : memref<64x128xf32, #tpu.memory_space<vmem>>, vector<8x128xf32>,
    %c0_110 = arith.constant 0 : index
    %c0_111 = arith.constant 0 : index
    %224 = vector.load %arg13[%c0_110, %c0_111] : memref<8x32xf32, #tpu.memory_space<vmem>>, vector<8x32xf32>
    tpu.vector_store %arg13[%c0_110, %c0_111], %217 {strides = array<i32>} : memref<8x32xf32, #tpu.memory_space<vmem>>, vector<8x32xf32>,
    %c0_112 = arith.constant 0 : index
    %c0_113 = arith.constant 0 : index
    %225 = vector.load %arg15[%c0_112, %c0_113] : memref<8x32xf32, #tpu.memory_space<vmem>>, vector<8x32xf32>
    tpu.vector_store %arg15[%c0_112, %c0_113], %215 {strides = array<i32>} : memref<8x32xf32, #tpu.memory_space<vmem>>, vector<8x32xf32>,
    %c0_114 = arith.constant 0 : index
    %c0_115 = arith.constant 0 : index
    %226 = vector.load %arg14[%c0_114, %c0_115] : memref<8x32xf32, #tpu.memory_space<vmem>>, vector<8x32xf32>
    %c0_116 = arith.constant 0 : index
    %c0_117 = arith.constant 0 : index
    %227 = vector.load %arg16[%c0_116, %c0_117] : memref<8x32xf32, #tpu.memory_space<vmem>>, vector<8x32xf32>
    %c0_118 = arith.constant 0 : index
    %c0_119 = arith.constant 0 : index
    %228 = vector.load %arg12[%c0_118, %c0_119] : memref<64x128xf32, #tpu.memory_space<vmem>>, vector<8x128xf32>
    %c0_120 = arith.constant 0 : index
    %c0_121 = arith.constant 0 : index
    %229 = vector.load %arg7[%c0_120, %c0_121] : memref<32x128xf32, #tpu.memory_space<vmem>>, vector<32x128xf32>
    %cst_122 = arith.constant dense<0.000000e+00> : vector<8x128xf32>
    %230 = tpu.matmul %226, %229, %cst_122 {dimension_numbers = #tpu.dot_dimension_numbers<[1], [0], [0], [1], [0, 0, 1, 1], [], []>} : vector<8x32xf32>, vector<32x128xf32>, vector<8x128xf32> -> vector<8x128xf32>
    %231 = arith.addf %228, %230 : vector<8x128xf32>
    %232 = arith.negf %231 : vector<8x128xf32>
    %233 = math.exp %232 : vector<8x128xf32>
    %cst_123 = arith.constant 1.000000e+00 : f32
    %234 = vector.broadcast %cst_123 : f32 to vector<8x128xf32>
    %235 = arith.addf %234, %233 : vector<8x128xf32>
    %236 = arith.divf %234, %235 : vector<8x128xf32>
    %237 = math.tanh %231 : vector<8x128xf32>
    %238 = arith.select %5, %236, %237 : vector<8x128xi1>, vector<8x128xf32>
    %239 = vector.extract_strided_slice %238 {offsets = [0, 0], sizes = [8, 32], strides = [1, 1]} : vector<8x128xf32> to vector<8x32xf32>
    %240 = vector.extract_strided_slice %238 {offsets = [0, 32], sizes = [8, 32], strides = [1, 1]} : vector<8x128xf32> to vector<8x32xf32>
    %241 = vector.extract_strided_slice %238 {offsets = [0, 64], sizes = [8, 32], strides = [1, 1]} : vector<8x128xf32> to vector<8x32xf32>
    %242 = vector.extract_strided_slice %238 {offsets = [0, 96], sizes = [8, 32], strides = [1, 1]} : vector<8x128xf32> to vector<8x32xf32>
    %243 = arith.mulf %240, %227 : vector<8x32xf32>
    %244 = arith.mulf %239, %242 : vector<8x32xf32>
    %245 = arith.addf %243, %244 : vector<8x32xf32>
    %246 = math.tanh %245 : vector<8x32xf32>
    %247 = arith.mulf %241, %246 : vector<8x32xf32>
    %c8_124 = arith.constant 8 : index
    %c0_125 = arith.constant 0 : index
    %248 = vector.load %arg12[%c8_124, %c0_125] : memref<64x128xf32, #tpu.memory_space<vmem>>, vector<8x128xf32>
    %c0_126 = arith.constant 0 : index
    %c0_127 = arith.constant 0 : index
    %249 = vector.load %arg7[%c0_126, %c0_127] : memref<32x128xf32, #tpu.memory_space<vmem>>, vector<32x128xf32>
    %cst_128 = arith.constant dense<0.000000e+00> : vector<8x128xf32>
    %250 = tpu.matmul %247, %249, %cst_128 {dimension_numbers = #tpu.dot_dimension_numbers<[1], [0], [0], [1], [0, 0, 1, 1], [], []>} : vector<8x32xf32>, vector<32x128xf32>, vector<8x128xf32> -> vector<8x128xf32>
    %251 = arith.addf %248, %250 : vector<8x128xf32>
    %252 = arith.negf %251 : vector<8x128xf32>
    %253 = math.exp %252 : vector<8x128xf32>
    %cst_129 = arith.constant 1.000000e+00 : f32
    %254 = vector.broadcast %cst_129 : f32 to vector<8x128xf32>
    %255 = arith.addf %254, %253 : vector<8x128xf32>
    %256 = arith.divf %254, %255 : vector<8x128xf32>
    %257 = math.tanh %251 : vector<8x128xf32>
    %258 = arith.select %5, %256, %257 : vector<8x128xi1>, vector<8x128xf32>
    %259 = vector.extract_strided_slice %258 {offsets = [0, 0], sizes = [8, 32], strides = [1, 1]} : vector<8x128xf32> to vector<8x32xf32>
    %260 = vector.extract_strided_slice %258 {offsets = [0, 32], sizes = [8, 32], strides = [1, 1]} : vector<8x128xf32> to vector<8x32xf32>
    %261 = vector.extract_strided_slice %258 {offsets = [0, 64], sizes = [8, 32], strides = [1, 1]} : vector<8x128xf32> to vector<8x32xf32>
    %262 = vector.extract_strided_slice %258 {offsets = [0, 96], sizes = [8, 32], strides = [1, 1]} : vector<8x128xf32> to vector<8x32xf32>
    %263 = arith.mulf %260, %245 : vector<8x32xf32>
    %264 = arith.mulf %259, %262 : vector<8x32xf32>
    %265 = arith.addf %263, %264 : vector<8x32xf32>
    %266 = math.tanh %265 : vector<8x32xf32>
    %267 = arith.mulf %261, %266 : vector<8x32xf32>
    %c16_130 = arith.constant 16 : index
    %c0_131 = arith.constant 0 : index
    %268 = vector.load %arg12[%c16_130, %c0_131] : memref<64x128xf32, #tpu.memory_space<vmem>>, vector<8x128xf32>
    %c0_132 = arith.constant 0 : index
    %c0_133 = arith.constant 0 : index
    %269 = vector.load %arg7[%c0_132, %c0_133] : memref<32x128xf32, #tpu.memory_space<vmem>>, vector<32x128xf32>
    %cst_134 = arith.constant dense<0.000000e+00> : vector<8x128xf32>
    %270 = tpu.matmul %267, %269, %cst_134 {dimension_numbers = #tpu.dot_dimension_numbers<[1], [0], [0], [1], [0, 0, 1, 1], [], []>} : vector<8x32xf32>, vector<32x128xf32>, vector<8x128xf32> -> vector<8x128xf32>
    %271 = arith.addf %268, %270 : vector<8x128xf32>
    %272 = arith.negf %271 : vector<8x128xf32>
    %273 = math.exp %272 : vector<8x128xf32>
    %cst_135 = arith.constant 1.000000e+00 : f32
    %274 = vector.broadcast %cst_135 : f32 to vector<8x128xf32>
    %275 = arith.addf %274, %273 : vector<8x128xf32>
    %276 = arith.divf %274, %275 : vector<8x128xf32>
    %277 = math.tanh %271 : vector<8x128xf32>
    %278 = arith.select %5, %276, %277 : vector<8x128xi1>, vector<8x128xf32>
    %279 = vector.extract_strided_slice %278 {offsets = [0, 0], sizes = [8, 32], strides = [1, 1]} : vector<8x128xf32> to vector<8x32xf32>
    %280 = vector.extract_strided_slice %278 {offsets = [0, 32], sizes = [8, 32], strides = [1, 1]} : vector<8x128xf32> to vector<8x32xf32>
    %281 = vector.extract_strided_slice %278 {offsets = [0, 64], sizes = [8, 32], strides = [1, 1]} : vector<8x128xf32> to vector<8x32xf32>
    %282 = vector.extract_strided_slice %278 {offsets = [0, 96], sizes = [8, 32], strides = [1, 1]} : vector<8x128xf32> to vector<8x32xf32>
    %283 = arith.mulf %280, %265 : vector<8x32xf32>
    %284 = arith.mulf %279, %282 : vector<8x32xf32>
    %285 = arith.addf %283, %284 : vector<8x32xf32>
    %286 = math.tanh %285 : vector<8x32xf32>
    %287 = arith.mulf %281, %286 : vector<8x32xf32>
    %c24_136 = arith.constant 24 : index
    %c0_137 = arith.constant 0 : index
    %288 = vector.load %arg12[%c24_136, %c0_137] : memref<64x128xf32, #tpu.memory_space<vmem>>, vector<8x128xf32>
    %c0_138 = arith.constant 0 : index
    %c0_139 = arith.constant 0 : index
    %289 = vector.load %arg7[%c0_138, %c0_139] : memref<32x128xf32, #tpu.memory_space<vmem>>, vector<32x128xf32>
    %cst_140 = arith.constant dense<0.000000e+00> : vector<8x128xf32>
    %290 = tpu.matmul %287, %289, %cst_140 {dimension_numbers = #tpu.dot_dimension_numbers<[1], [0], [0], [1], [0, 0, 1, 1], [], []>} : vector<8x32xf32>, vector<32x128xf32>, vector<8x128xf32> -> vector<8x128xf32>
    %291 = arith.addf %288, %290 : vector<8x128xf32>
    %292 = arith.negf %291 : vector<8x128xf32>
    %293 = math.exp %292 : vector<8x128xf32>
    %cst_141 = arith.constant 1.000000e+00 : f32
    %294 = vector.broadcast %cst_141 : f32 to vector<8x128xf32>
    %295 = arith.addf %294, %293 : vector<8x128xf32>
    %296 = arith.divf %294, %295 : vector<8x128xf32>
    %297 = math.tanh %291 : vector<8x128xf32>
    %298 = arith.select %5, %296, %297 : vector<8x128xi1>, vector<8x128xf32>
    %299 = vector.extract_strided_slice %298 {offsets = [0, 0], sizes = [8, 32], strides = [1, 1]} : vector<8x128xf32> to vector<8x32xf32>
    %300 = vector.extract_strided_slice %298 {offsets = [0, 32], sizes = [8, 32], strides = [1, 1]} : vector<8x128xf32> to vector<8x32xf32>
    %301 = vector.extract_strided_slice %298 {offsets = [0, 64], sizes = [8, 32], strides = [1, 1]} : vector<8x128xf32> to vector<8x32xf32>
    %302 = vector.extract_strided_slice %298 {offsets = [0, 96], sizes = [8, 32], strides = [1, 1]} : vector<8x128xf32> to vector<8x32xf32>
    %303 = arith.mulf %300, %285 : vector<8x32xf32>
    %304 = arith.mulf %299, %302 : vector<8x32xf32>
    %305 = arith.addf %303, %304 : vector<8x32xf32>
    %306 = math.tanh %305 : vector<8x32xf32>
    %307 = arith.mulf %301, %306 : vector<8x32xf32>
    %c32_142 = arith.constant 32 : index
    %c0_143 = arith.constant 0 : index
    %308 = vector.load %arg12[%c32_142, %c0_143] : memref<64x128xf32, #tpu.memory_space<vmem>>, vector<8x128xf32>
    %c0_144 = arith.constant 0 : index
    %c0_145 = arith.constant 0 : index
    %309 = vector.load %arg7[%c0_144, %c0_145] : memref<32x128xf32, #tpu.memory_space<vmem>>, vector<32x128xf32>
    %cst_146 = arith.constant dense<0.000000e+00> : vector<8x128xf32>
    %310 = tpu.matmul %307, %309, %cst_146 {dimension_numbers = #tpu.dot_dimension_numbers<[1], [0], [0], [1], [0, 0, 1, 1], [], []>} : vector<8x32xf32>, vector<32x128xf32>, vector<8x128xf32> -> vector<8x128xf32>
    %311 = arith.addf %308, %310 : vector<8x128xf32>
    %312 = arith.negf %311 : vector<8x128xf32>
    %313 = math.exp %312 : vector<8x128xf32>
    %cst_147 = arith.constant 1.000000e+00 : f32
    %314 = vector.broadcast %cst_147 : f32 to vector<8x128xf32>
    %315 = arith.addf %314, %313 : vector<8x128xf32>
    %316 = arith.divf %314, %315 : vector<8x128xf32>
    %317 = math.tanh %311 : vector<8x128xf32>
    %318 = arith.select %5, %316, %317 : vector<8x128xi1>, vector<8x128xf32>
    %319 = vector.extract_strided_slice %318 {offsets = [0, 0], sizes = [8, 32], strides = [1, 1]} : vector<8x128xf32> to vector<8x32xf32>
    %320 = vector.extract_strided_slice %318 {offsets = [0, 32], sizes = [8, 32], strides = [1, 1]} : vector<8x128xf32> to vector<8x32xf32>
    %321 = vector.extract_strided_slice %318 {offsets = [0, 64], sizes = [8, 32], strides = [1, 1]} : vector<8x128xf32> to vector<8x32xf32>
    %322 = vector.extract_strided_slice %318 {offsets = [0, 96], sizes = [8, 32], strides = [1, 1]} : vector<8x128xf32> to vector<8x32xf32>
    %323 = arith.mulf %320, %305 : vector<8x32xf32>
    %324 = arith.mulf %319, %322 : vector<8x32xf32>
    %325 = arith.addf %323, %324 : vector<8x32xf32>
    %326 = math.tanh %325 : vector<8x32xf32>
    %327 = arith.mulf %321, %326 : vector<8x32xf32>
    %c40_148 = arith.constant 40 : index
    %c0_149 = arith.constant 0 : index
    %328 = vector.load %arg12[%c40_148, %c0_149] : memref<64x128xf32, #tpu.memory_space<vmem>>, vector<8x128xf32>
    %c0_150 = arith.constant 0 : index
    %c0_151 = arith.constant 0 : index
    %329 = vector.load %arg7[%c0_150, %c0_151] : memref<32x128xf32, #tpu.memory_space<vmem>>, vector<32x128xf32>
    %cst_152 = arith.constant dense<0.000000e+00> : vector<8x128xf32>
    %330 = tpu.matmul %327, %329, %cst_152 {dimension_numbers = #tpu.dot_dimension_numbers<[1], [0], [0], [1], [0, 0, 1, 1], [], []>} : vector<8x32xf32>, vector<32x128xf32>, vector<8x128xf32> -> vector<8x128xf32>
    %331 = arith.addf %328, %330 : vector<8x128xf32>
    %332 = arith.negf %331 : vector<8x128xf32>
    %333 = math.exp %332 : vector<8x128xf32>
    %cst_153 = arith.constant 1.000000e+00 : f32
    %334 = vector.broadcast %cst_153 : f32 to vector<8x128xf32>
    %335 = arith.addf %334, %333 : vector<8x128xf32>
    %336 = arith.divf %334, %335 : vector<8x128xf32>
    %337 = math.tanh %331 : vector<8x128xf32>
    %338 = arith.select %5, %336, %337 : vector<8x128xi1>, vector<8x128xf32>
    %339 = vector.extract_strided_slice %338 {offsets = [0, 0], sizes = [8, 32], strides = [1, 1]} : vector<8x128xf32> to vector<8x32xf32>
    %340 = vector.extract_strided_slice %338 {offsets = [0, 32], sizes = [8, 32], strides = [1, 1]} : vector<8x128xf32> to vector<8x32xf32>
    %341 = vector.extract_strided_slice %338 {offsets = [0, 64], sizes = [8, 32], strides = [1, 1]} : vector<8x128xf32> to vector<8x32xf32>
    %342 = vector.extract_strided_slice %338 {offsets = [0, 96], sizes = [8, 32], strides = [1, 1]} : vector<8x128xf32> to vector<8x32xf32>
    %343 = arith.mulf %340, %325 : vector<8x32xf32>
    %344 = arith.mulf %339, %342 : vector<8x32xf32>
    %345 = arith.addf %343, %344 : vector<8x32xf32>
    %346 = math.tanh %345 : vector<8x32xf32>
    %347 = arith.mulf %341, %346 : vector<8x32xf32>
    %c48_154 = arith.constant 48 : index
    %c0_155 = arith.constant 0 : index
    %348 = vector.load %arg12[%c48_154, %c0_155] : memref<64x128xf32, #tpu.memory_space<vmem>>, vector<8x128xf32>
    %c0_156 = arith.constant 0 : index
    %c0_157 = arith.constant 0 : index
    %349 = vector.load %arg7[%c0_156, %c0_157] : memref<32x128xf32, #tpu.memory_space<vmem>>, vector<32x128xf32>
    %cst_158 = arith.constant dense<0.000000e+00> : vector<8x128xf32>
    %350 = tpu.matmul %347, %349, %cst_158 {dimension_numbers = #tpu.dot_dimension_numbers<[1], [0], [0], [1], [0, 0, 1, 1], [], []>} : vector<8x32xf32>, vector<32x128xf32>, vector<8x128xf32> -> vector<8x128xf32>
    %351 = arith.addf %348, %350 : vector<8x128xf32>
    %352 = arith.negf %351 : vector<8x128xf32>
    %353 = math.exp %352 : vector<8x128xf32>
    %cst_159 = arith.constant 1.000000e+00 : f32
    %354 = vector.broadcast %cst_159 : f32 to vector<8x128xf32>
    %355 = arith.addf %354, %353 : vector<8x128xf32>
    %356 = arith.divf %354, %355 : vector<8x128xf32>
    %357 = math.tanh %351 : vector<8x128xf32>
    %358 = arith.select %5, %356, %357 : vector<8x128xi1>, vector<8x128xf32>
    %359 = vector.extract_strided_slice %358 {offsets = [0, 0], sizes = [8, 32], strides = [1, 1]} : vector<8x128xf32> to vector<8x32xf32>
    %360 = vector.extract_strided_slice %358 {offsets = [0, 32], sizes = [8, 32], strides = [1, 1]} : vector<8x128xf32> to vector<8x32xf32>
    %361 = vector.extract_strided_slice %358 {offsets = [0, 64], sizes = [8, 32], strides = [1, 1]} : vector<8x128xf32> to vector<8x32xf32>
    %362 = vector.extract_strided_slice %358 {offsets = [0, 96], sizes = [8, 32], strides = [1, 1]} : vector<8x128xf32> to vector<8x32xf32>
    %363 = arith.mulf %360, %345 : vector<8x32xf32>
    %364 = arith.mulf %359, %362 : vector<8x32xf32>
    %365 = arith.addf %363, %364 : vector<8x32xf32>
    %366 = math.tanh %365 : vector<8x32xf32>
    %367 = arith.mulf %361, %366 : vector<8x32xf32>
    %c56_160 = arith.constant 56 : index
    %c0_161 = arith.constant 0 : index
    %368 = vector.load %arg12[%c56_160, %c0_161] : memref<64x128xf32, #tpu.memory_space<vmem>>, vector<8x128xf32>
    %c0_162 = arith.constant 0 : index
    %c0_163 = arith.constant 0 : index
    %369 = vector.load %arg7[%c0_162, %c0_163] : memref<32x128xf32, #tpu.memory_space<vmem>>, vector<32x128xf32>
    %cst_164 = arith.constant dense<0.000000e+00> : vector<8x128xf32>
    %370 = tpu.matmul %367, %369, %cst_164 {dimension_numbers = #tpu.dot_dimension_numbers<[1], [0], [0], [1], [0, 0, 1, 1], [], []>} : vector<8x32xf32>, vector<32x128xf32>, vector<8x128xf32> -> vector<8x128xf32>
    %371 = arith.addf %368, %370 : vector<8x128xf32>
    %372 = arith.negf %371 : vector<8x128xf32>
    %373 = math.exp %372 : vector<8x128xf32>
    %cst_165 = arith.constant 1.000000e+00 : f32
    %374 = vector.broadcast %cst_165 : f32 to vector<8x128xf32>
    %375 = arith.addf %374, %373 : vector<8x128xf32>
    %376 = arith.divf %374, %375 : vector<8x128xf32>
    %377 = math.tanh %371 : vector<8x128xf32>
    %378 = arith.select %5, %376, %377 : vector<8x128xi1>, vector<8x128xf32>
    %379 = vector.extract_strided_slice %378 {offsets = [0, 0], sizes = [8, 32], strides = [1, 1]} : vector<8x128xf32> to vector<8x32xf32>
    %380 = vector.extract_strided_slice %378 {offsets = [0, 32], sizes = [8, 32], strides = [1, 1]} : vector<8x128xf32> to vector<8x32xf32>
    %381 = vector.extract_strided_slice %378 {offsets = [0, 64], sizes = [8, 32], strides = [1, 1]} : vector<8x128xf32> to vector<8x32xf32>
    %382 = vector.extract_strided_slice %378 {offsets = [0, 96], sizes = [8, 32], strides = [1, 1]} : vector<8x128xf32> to vector<8x32xf32>
    %383 = arith.mulf %380, %365 : vector<8x32xf32>
    %384 = arith.mulf %379, %382 : vector<8x32xf32>
    %385 = arith.addf %383, %384 : vector<8x32xf32>
    %386 = math.tanh %385 : vector<8x32xf32>
    %387 = arith.mulf %381, %386 : vector<8x32xf32>
    %c0_166 = arith.constant 0 : index
    %c0_167 = arith.constant 0 : index
    %388 = vector.load %arg14[%c0_166, %c0_167] : memref<8x32xf32, #tpu.memory_space<vmem>>, vector<8x32xf32>
    tpu.vector_store %arg14[%c0_166, %c0_167], %387 {strides = array<i32>} : memref<8x32xf32, #tpu.memory_space<vmem>>, vector<8x32xf32>,
    %c0_168 = arith.constant 0 : index
    %c0_169 = arith.constant 0 : index
    %389 = vector.load %arg16[%c0_168, %c0_169] : memref<8x32xf32, #tpu.memory_space<vmem>>, vector<8x32xf32>
    tpu.vector_store %arg16[%c0_168, %c0_169], %385 {strides = array<i32>} : memref<8x32xf32, #tpu.memory_space<vmem>>, vector<8x32xf32>,
    %c1_i32 = arith.constant 1 : i32
    %390 = arith.cmpi eq, %arg1, %c1_i32 : i32
    %391 = arith.extui %390 : i1 to i32
    %c0_i32_170 = arith.constant 0 : i32
    %392 = arith.cmpi ne, %391, %c0_i32_170 : i32
    scf.if %392 {
      %c0_171 = arith.constant 0 : index
      %c0_172 = arith.constant 0 : index
      %393 = vector.load %arg14[%c0_171, %c0_172] : memref<8x32xf32, #tpu.memory_space<vmem>>, vector<8x32xf32>
      %c0_173 = arith.constant 0 : index
      %c0_174 = arith.constant 0 : index
      %394 = vector.load %arg9[%c0_173, %c0_174] : memref<32x8xf32, #tpu.memory_space<vmem>>, vector<32x8xf32>
      %cst_175 = arith.constant dense<0.000000e+00> : vector<8x8xf32>
      %395 = tpu.matmul %393, %394, %cst_175 {dimension_numbers = #tpu.dot_dimension_numbers<[1], [0], [0], [1], [0, 0, 1, 1], [], []>} : vector<8x32xf32>, vector<32x8xf32>, vector<8x8xf32> -> vector<8x8xf32>
      %c0_176 = arith.constant 0 : index
      %c0_177 = arith.constant 0 : index
      %396 = vector.load %arg10[%c0_176, %c0_177] : memref<1x8xf32, #tpu.memory_space<vmem>>, vector<1x8xf32>
      %397 = vector.broadcast %396 : vector<1x8xf32> to vector<8x8xf32>
      %398 = arith.addf %395, %397 : vector<8x8xf32>
      %c0_178 = arith.constant 0 : index
      %c0_179 = arith.constant 0 : index
      %399 = vector.load %arg11[%c0_178, %c0_179] : memref<8x8xf32, #tpu.memory_space<vmem>>, vector<8x8xf32>
      tpu.vector_store %arg11[%c0_178, %c0_179], %398 {strides = array<i32>} : memref<8x8xf32, #tpu.memory_space<vmem>>, vector<8x8xf32>,
    } else {
    }
    return
  }
  func.func @transform_0(%arg0: i32, %arg1: i32) -> (i32, i32, i32) {
    %c0_i32 = arith.constant 0 : i32
    %c0_i32_0 = arith.constant 0 : i32
    return %arg0, %arg1, %c0_i32 : i32, i32, i32
  }
  func.func @transform_1(%arg0: i32, %arg1: i32) -> (i32, i32) {
    %c0_i32 = arith.constant 0 : i32
    %c0_i32_0 = arith.constant 0 : i32
    %c0_i32_1 = arith.constant 0 : i32
    return %c0_i32, %c0_i32_0 : i32, i32
  }
  func.func @transform_2(%arg0: i32, %arg1: i32) -> (i32, i32) {
    %c0_i32 = arith.constant 0 : i32
    %c0_i32_0 = arith.constant 0 : i32
    %c0_i32_1 = arith.constant 0 : i32
    return %c0_i32, %c0_i32_0 : i32, i32
  }
  func.func @transform_3(%arg0: i32, %arg1: i32) -> (i32, i32) {
    %c0_i32 = arith.constant 0 : i32
    %c0_i32_0 = arith.constant 0 : i32
    %c0_i32_1 = arith.constant 0 : i32
    return %c0_i32, %c0_i32_0 : i32, i32
  }
  func.func @transform_4(%arg0: i32, %arg1: i32) -> (i32, i32) {
    %c0_i32 = arith.constant 0 : i32
    %c0_i32_0 = arith.constant 0 : i32
    %c0_i32_1 = arith.constant 0 : i32
    return %c0_i32, %c0_i32_0 : i32, i32
  }
  func.func @transform_5(%arg0: i32, %arg1: i32) -> (i32, i32) {
    %c0_i32 = arith.constant 0 : i32
    %c0_i32_0 = arith.constant 0 : i32
    %c0_i32_1 = arith.constant 0 : i32
    return %c0_i32, %c0_i32_0 : i32, i32
  }
  func.func @transform_6(%arg0: i32, %arg1: i32) -> (i32, i32) {
    %c0_i32 = arith.constant 0 : i32
    %c0_i32_0 = arith.constant 0 : i32
    %c0_i32_1 = arith.constant 0 : i32
    return %c0_i32, %c0_i32_0 : i32, i32
  }
  func.func @transform_7(%arg0: i32, %arg1: i32) -> (i32, i32) {
    %c0_i32 = arith.constant 0 : i32
    %c0_i32_0 = arith.constant 0 : i32
    %c0_i32_1 = arith.constant 0 : i32
    return %c0_i32, %c0_i32_0 : i32, i32
  }
  func.func @transform_8(%arg0: i32, %arg1: i32) -> (i32, i32) {
    %c0_i32 = arith.constant 0 : i32
    %c0_i32_0 = arith.constant 0 : i32
    %c0_i32_1 = arith.constant 0 : i32
    return %c0_i32, %c0_i32_0 : i32, i32
  }
  func.func @transform_9(%arg0: i32, %arg1: i32) -> (i32, i32) {
    %c0_i32 = arith.constant 0 : i32
    %c0_i32_0 = arith.constant 0 : i32
    return %arg0, %c0_i32 : i32, i32
  }
}

</mosaic_0001>

<bundles_post_ra>
// kernel: classical_lstm_forward.1
= control target key start
LH: loop header
LB: loop body
LE: loop exit
PB: predicated region body
PF: predicated region fallthrough
CT: control target
= control target key end

     0   :  { %s3954_s30 = smov 0   ;;  %s3956_s10 = smov 0   ;;  %s4405_s0 = inlined_call_operand.vmem [shape: f32[1,128,16], index: 0, kind: input, shape index: {}]   ;;  %s4406_s1 = inlined_call_operand.vmem [shape: f32[16,128], index: 1, kind: input, shape index: {}]   ;;  %s4407_s2 = inlined_call_operand.vmem [shape: f32[32,128], index: 2, kind: input, shape index: {}]   ;;  %s4408_s3 = inlined_call_operand.vmem [shape: f32[1,128], index: 3, kind: input, shape index: {}]   ;;  %s4409_s4 = inlined_call_operand.vmem [shape: f32[32,128], index: 4, kind: input, shape index: {}]   ;;  %s4410_s5 = inlined_call_operand.vmem [shape: f32[32,128], index: 5, kind: input, shape index: {}]   ;;  %s4411_s6 = inlined_call_operand.vmem [shape: f32[1,128], index: 6, kind: input, shape index: {}]   ;;  %s4412_s7 = inlined_call_operand.vmem [shape: f32[32,8], index: 7, kind: input, shape index: {}]   ;;  %s4413_s8 = inlined_call_operand.vmem [shape: f32[1,8], index: 8, kind: input, shape index: {}]   ;;  %s4414_s9 = inlined_call_operand.vmem [shape: f32[8,8], index: 9, kind: output, shape index: {}]  }
   0x1   :  { %s3958_s11 = smov 0  }
   0x2 LB: > { %s28_s12 = sadd.s32 1, %s3888_s10  ;;  %p3040_p0 = scmp.ge.s32.totalorder %s3892_s11, 1  ;;  %s3892_s11 = sphi %s3958_s11, %s19_s11   ;;  %s3888_s10 = sphi %s3956_s10, %s4416_s10   ;;  %s3884_s30 = sphi %s3954_s30, %s4415_s30  }
   0x3   : > { %p29_p1 = scmp.ge.s32.totalorder %s28_s12, 2  ;;  %p306_p2 = scmp.lt.s32.totalorder %s3892_s11, 3 }
   0x5   : > { %s4418_s12 = smov (%p29_p1, %s28_s12), 0  ;;  %p307_p3 = pnand %p3040_p0, %p306_p2 }
   0x6   : > { %s3041_s13 = sshll.u32 (!%p307_p3), %s3884_s30, 3  ;;  %p3043_p5 = scmp.ne.s32.totalorder (!%p307_p3), %s3884_s30, 0 }
   0x7   : > { %310 = sbr.rel (%p307_p3) target bundleno = 11787 (0x2e0b), region = 56  ;;  %p348_p4 = scmp.lt.s32.totalorder (!%p307_p3), %s3041_s13, 15 }
   0xe   : > { %s4420_s13 = smov (!%p348_p4, %s3041_s13), 15  ;;  %362 = sbr.rel (%p3043_p5) target bundleno = 21 (0x15), region = 60 }
   0xf   : > { %s3042_s14 = sshll.u32 %s4420_s13, 3  ;;  %vm363_vm0 = vcmask (!%p3043_p5), 261120   ;;  %v3894_v0 = vmov (!%p3043_p5), 0.0  }
  0x10   : > { %s3978_s17 = scalar_lea.vmem %s4405_s0, %s3042_s14  ;;  %364 = vst.msk [vmem:[#allocation3] sm:$0xff] (!%p3043_p5), %vm363_vm0, %v3894_v0  ;;  %365 = vst.msk [vmem:[#allocation5] sm:$0xff] (!%p3043_p5), %vm363_vm0, %v3894_v0 }
  0x11   : > { %366 = vst.msk [vmem:[#allocation4] sm:$0xff] (!%p3043_p5), %vm363_vm0, %v3894_v0  ;;  %367 = vst.msk [vmem:[#allocation6] sm:$0xff] (!%p3043_p5), %vm363_vm0, %v3894_v0 }
  0x15 PF: > { %v379_v1 = vld [vmem:[%s4406_s1] sm:$0xff]  ;;  %v380_v2 = vld [vmem:[%s4406_s1 + $0x8] sm:$0xff]  ;;  %vm388_vm1 = vcmask 130048   ;;  %v3895_v7 = vmov 0.0|0.0   ;;  %vm3896_vm2 = vmmov 0   ;;  %v3897_v8 = vmov 0.0  }
  0x16   : > { %v371_v3 = vld [vmem:[%s3978_s17] sm:$0xff]  ;;  %v3533_v4 = vpack.c.bf16 %v380_v2, %v379_v1  ;;  %v530_v6 = vld [vmem:[%s4407_s2 + $0x8] sm:$0xff]  ;;  %3579 = vmatprep.subr.bf16.mxu1 %v3895_v7  ;;  %3343 = vmatprep.mubr.msk.f32.mxu1 %vm3896_vm2, %v3897_v8  ;;  %v373_v11 = vld [vmem:[%s3978_s17 + $0x10] sm:$0xff]  ;;  %vm533_vm3 = vcmask 261120   ;;  %v368_v44 = vlaneseq  ;;  %s3898_s15 = smov 32   ;;  %s3899_s24 = smov 64  }
  0x17   : > { %3246 = vmatprep.mubr.msk.f32.mxu0 %vm388_vm1, %v371_v3  ;;  %v529_v5 = vld [vmem:[%s4407_s2] sm:$0xff]  ;;  %v372_v9 = vld [vmem:[%s3978_s17 + $0x8] sm:$0xff]  ;;  %v531_v12 = vld [vmem:[%s4407_s2 + $0x10] sm:$0xff]  ;;  %s3900_s21 = smov 96   ;;  %p3101_p6 = scmp.ne.s32.totalorder %s3884_s30, 1 }
  0x18   : > { %3534 = vmatprep.subr.bf16.mxu0 %v3533_v4  ;;  %v3999_v10 = vpack.c.bf16 %v530_v6, %v529_v5  ;;  %v532_v13 = vld [vmem:[%s4407_s2 + $0x18] sm:$0xff]  ;;  %v375_v16 = vld [vmem:[%s3978_s17 + $0x20] sm:$0xff]  ;;  %v376_v17 = vld [vmem:[%s3978_s17 + $0x28] sm:$0xff]  ;;  %v4049_v45 = vand.u32 127, %v368_v44  ;;  %vm3902_vm5 = vmmov (!%p3101_p6), 0   ;;  %vm2970_vm6 = vcmask (!%p3101_p6), 64512  }
  0x19   : > { %3536 = vmatpush3.bf16.msra.mxu0 %v3533_v4  ;;  %v374_v14 = vld [vmem:[%s3978_s17 + $0x18] sm:$0xff]  ;;  %v4013_v15 = vpack.c.bf16 %v532_v13, %v531_v12  ;;  %v377_v18 = vld [vmem:[%s3978_s17 + $0x30] sm:$0xff]  ;;  %v526_v20 = vld [vmem:[#allocation3] sm:$0xff] }
  0x1a   : > { %3537 = vmatprep.subr.bf16.mxu0 %v3895_v7  ;;  %v378_v19 = vld [vmem:[%s3978_s17 + $0x38] sm:$0xff]  ;;  %v3044_v21 = vld [vmem:[%s4408_s3] ss:$0 sm:$0xff]  ;;  %vm370_vm4 = vcmp.lt.s32.totalorder %v4049_v45, 96  ;;  %v527_v49 = vld [vmem:[#allocation5] sm:$0xff] }
  0x1b   : > { %v637_v56 = vld [vmem:[%s4409_s4] sm:$0xff]  ;;  %v638_v57 = vld [vmem:[%s4409_s4 + $0x8] sm:$0xff]  ;;  %v639_v58 = vld [vmem:[%s4409_s4 + $0x10] sm:$0xff] }
  0x1c   : > { %3247 = vmatmul.mubr.msk.f32.vlgmr.msra.gmra.mrb[0].mxu0 %vm388_vm1, %v372_v9  ;;  %v4066_v59 = vpack.c.bf16 %v638_v57, %v637_v56  ;;  %v640_v60 = vld [vmem:[%s4409_s4 + $0x18] sm:$0xff] }
  0x1d   : > { %3539 = vmatpush3.bf16.msra.mxu0 %v3999_v10  ;;  %3249 = vmatprep.mubr.msk.f32.mxu0 %vm388_vm1, %v373_v11  ;;  %v4072_v61 = vpack.c.bf16 %v640_v60, %v639_v58 }
  0x1e   : > { %3540 = vmatprep.subr.bf16.mxu0 %v3895_v7  ;;  %3581 = vmatpush3.bf16.msra.mxu1 %v4066_v59 }
  0x1f   : > { %3582 = vmatprep.subr.bf16.mxu1 %v3895_v7 }
  0x20   : > { %3250 = vmatmul.mubr.msk.f32.gmra.mrb[2].mxu0 %vm388_vm1, %v374_v14 }
  0x21   : > { %3252 = vmatprep.mubr.msk.f32.mxu0 %vm388_vm1, %v375_v16  ;;  %3542 = vmatpush3.bf16.msra.mxu0 %v4013_v15 }
  0x22   : > { %3543 = vmatprep.subr.bf16.mxu0 %v3895_v7  ;;  %3584 = vmatpush3.bf16.msra.mxu1 %v4072_v61 }
  0x23   : > { %3591 = vmatprep.subr.bf16.mxu1 %v3895_v7 }
  0x24   : > { %3253 = vmatmul.mubr.msk.f32.gmra.mrb[4].mxu0 %vm388_vm1, %v376_v17 }
  0x25   : > { %3255 = vmatprep.mubr.msk.f32.mxu0 %vm388_vm1, %v377_v18 }
  0x28   : > { %3256 = vmatmul.mubr.msk.f32.gmra.mrb[6].mxu0 %vm388_vm1, %v378_v19 }
  0x29   : > { %3266 = vmatprep.mubr.msk.f32.mxu0 %vm3896_vm2, %v3897_v8 }
  0x2c   : > { %3267 = vmatmul.mubr.msk.f32.vlgmr.msra.gmra.mrb[8].mxu0 %vm533_vm3, %v526_v20 }
  0x2d   : > { %3277 = vmatprep.mubr.msk.f32.mxu0 %vm3896_vm2, %v3897_v8  ;;  %3545 = vmatpush3.bf16.msra.mxu0 %v4066_v59 }
  0x2e   : > { %3546 = vmatprep.subr.bf16.mxu0 %v3895_v7 }
  0x31   : > { %3548 = vmatpush3.bf16.msra.mxu0 %v4072_v61 }
  0x32   : > { %3549 = vmatprep.subr.bf16.mxu0 %v3895_v7 }
  0xef   : > { %v3248_v22 = vpop.f32.mrb[0].mxu0 }
  0xf0   : > { %v4035_v23 = vadd.f32 %v3248_v22, %v3044_v21  ;;  %v479_v24 = vpop.f32.mrb[1].mxu0 }
  0xf1   : > { %v480_v37 = vadd.f32 %v3044_v21, %v479_v24 }
  0xf3   : > { %v3251_v25 = vpop.f32.mrb[2].mxu0 }
  0xf4   : > { %v4037_v26 = vadd.f32 %v3251_v25, %v3044_v21  ;;  %v489_v27 = vpop.f32.mrb[3].mxu0 }
  0xf5   : > { %v4039_v28 = vadd.f32 %v3044_v21, %v489_v27 }
  0xf7   : > { %v3254_v29 = vpop.f32.mrb[4].mxu0 }
  0xf8   : > { %v4041_v30 = vadd.f32 %v3254_v29, %v3044_v21  ;;  %v499_v31 = vpop.f32.mrb[5].mxu0 }
  0xf9   : > { %v4043_v32 = vadd.f32 %v3044_v21, %v499_v31 }
  0xfb   : > { %v3257_v33 = vpop.f32.mrb[6].mxu0 }
  0xfc   : > { %v4045_v34 = vadd.f32 %v3257_v33, %v3044_v21  ;;  %v509_v35 = vpop.f32.mrb[7].mxu0 }
  0xfd   : > { %v4047_v36 = vadd.f32 %v3044_v21, %v509_v35 }
  0xff   : > { %v603_v38 = vpop.f32.mrb[8].mxu0 }
 0x100   : > { %v607_v39 = vadd.f32 %v603_v38, %v480_v37  ;;  %v3268_v40 = vpop.f32.mrb[9].mxu0 }
 0x102   : > { %v3054_v41 = vmul.f32 -1.442695, %v607_v39 }
 0x104   : > { %3742 = vpow2.f32 %v3054_v41 }
 0x105   : > { %3744 = vtanh.f32 %v607_v39 }
 0x10e   : > { %v3743_v42 = vpop.eup %3742 }
 0x10f   : > { %v611_v43 = vadd.f32 1.0, %v3743_v42  ;;  %v3745_v46 = vpop.eup %3744 }
 0x111   : > { %3746 = vrcp.f32 %v611_v43 }
 0x11b   : > { %v3747_v47 = vpop.eup %3746 }
 0x11c   : > { %v615_v48 = vsel %vm370_vm4, %v3747_v47, %v3745_v46 }
 0x11d   : > { %622 = vrot.lane.b32.xlu0 %v615_v48, %s3898_s15 }
 0x121   : > { %617 = vrot.lane.b32.xlu0 %v527_v49, %s3898_s15 }
 0x18f   : > { %v623_v50 = vpop.permute.xlu0 %622 }
 0x190   : > { %v625_v51 = vmul.f32 %v623_v50, %v615_v48 }
 0x192   : > { %627 = vrot.lane.b32.xlu1 %v625_v51, %s3898_s15 }
 0x193   : > { %v618_v52 = vpop.permute.xlu0 %617 }
 0x194   : > { %v620_v53 = vmul.f32 %v618_v52, %v615_v48 }
 0x204   : > { %v628_v54 = vpop.permute.xlu1 %627 }
 0x205   : > { %v630_v55 = vadd.f32 %v628_v54, %v620_v53 }
 0x207   : > { %3748 = vtanh.f32 %v630_v55 }
 0x211   : > { %v3749_v62 = vpop.eup %3748 }
 0x212   : > { %633 = vrot.lane.b32.xlu1 %v3749_v62, %s3898_s15 }
 0x284   : > { %v634_v63 = vpop.permute.xlu1 %633 }
 0x285   : > { %v636_v0 = vmul.f32 %v634_v63, %v615_v48 }
 0x287   : > { %649 = vrot.lane.b32.xlu0 %v636_v0, %s3899_s24 }
 0x2f9   : > { %v650_v1 = vpop.permute.xlu0 %649 }
 0x2fa   : > { %3278 = vmatmul.mubr.msk.f32.vlgmr.msra.gmra.mrb[10].mxu0 %vm533_vm3, %v650_v1 }
 0x2fb   : > { %3551 = vmatpush3.bf16.msra.mxu0 %v3999_v10  ;;  %3288 = vmatprep.mubr.msk.f32.mxu0 %vm3896_vm2, %v3897_v8 }
 0x2fc   : > { %3552 = vmatprep.subr.bf16.mxu0 %v3895_v7 }
 0x2ff   : > { %3554 = vmatpush3.bf16.msra.mxu0 %v4013_v15 }
 0x300   : > { %3555 = vmatprep.subr.bf16.mxu0 %v3895_v7 }
 0x302   : > { %3289 = vmatmul.mubr.msk.f32.vlgmr.msra.gmra.mrb[12].mxu0 %vm533_vm3, %v650_v1 }
 0x303   : > { %3557 = vmatpush3.bf16.msra.mxu0 %v4066_v59  ;;  %3299 = vmatprep.mubr.msk.f32.mxu0 %vm3896_vm2, %v3897_v8 }
 0x304   : > { %3558 = vmatprep.subr.bf16.mxu0 %v3895_v7 }
 0x307   : > { %3560 = vmatpush3.bf16.msra.mxu0 %v4072_v61 }
 0x308   : > { %3561 = vmatprep.subr.bf16.mxu0 %v3895_v7 }
 0x3cd   : > { %v4097_v2 = vpop.f32.mrb[10].mxu0 }
 0x3ce   : > { %v3279_v3 = vpop.f32.mrb[11].mxu0 }
 0x3d5   : > { %v795_v4 = vpop.f32.mrb[12].mxu0 }
 0x3d6   : > { %v799_v5 = vadd.f32 %v795_v4, %v4035_v23  ;;  %v3290_v6 = vpop.f32.mrb[13].mxu0 }
 0x3d8   : > { %v3058_v9 = vmul.f32 -1.442695, %v799_v5 }
 0x3da   : > { %3750 = vpow2.f32 %v3058_v9 }
 0x3db   : > { %3752 = vtanh.f32 %v799_v5 }
 0x3e4   : > { %v3751_v11 = vpop.eup %3750 }
 0x3e5   : > { %v803_v12 = vadd.f32 1.0, %v3751_v11  ;;  %v3753_v13 = vpop.eup %3752 }
 0x3e7   : > { %3754 = vrcp.f32 %v803_v12 }
 0x3f1   : > { %v3755_v14 = vpop.eup %3754 }
 0x3f2   : > { %v807_v16 = vsel %vm370_vm4, %v3755_v14, %v3753_v13 }
 0x3f3   : > { %810 = vrot.lane.b32.xlu1 %v807_v16, %s3898_s15  ;;  %v808_v19 = vmul.f32 %v807_v16, %v630_v55 }
 0x465   : > { %v811_v17 = vpop.permute.xlu1 %810 }
 0x466   : > { %v813_v18 = vmul.f32 %v811_v17, %v807_v16 }
 0x468   : > { %815 = vrot.lane.b32.xlu0 %v813_v18, %s3898_s15 }
 0x4da   : > { %v816_v20 = vpop.permute.xlu0 %815 }
 0x4db   : > { %v818_v21 = vadd.f32 %v816_v20, %v808_v19 }
 0x4dd   : > { %3756 = vtanh.f32 %v818_v21 }
 0x4e7   : > { %v3757_v22 = vpop.eup %3756 }
 0x4e8   : > { %821 = vrot.lane.b32.xlu1 %v3757_v22, %s3898_s15 }
 0x55a   : > { %v822_v23 = vpop.permute.xlu1 %821 }
 0x55b   : > { %v824_v24 = vmul.f32 %v822_v23, %v807_v16 }
 0x55d   : > { %837 = vrot.lane.b32.xlu0 %v824_v24, %s3899_s24 }
 0x5cf   : > { %v838_v25 = vpop.permute.xlu0 %837 }
 0x5d0   : > { %3300 = vmatmul.mubr.msk.f32.vlgmr.msra.gmra.mrb[14].mxu0 %vm533_vm3, %v838_v25 }
 0x5d1   : > { %3563 = vmatpush3.bf16.msra.mxu0 %v3999_v10  ;;  %3310 = vmatprep.mubr.msk.f32.mxu0 %vm3896_vm2, %v3897_v8 }
 0x5d2   : > { %3564 = vmatprep.subr.bf16.mxu0 %v3895_v7 }
 0x5d5   : > { %3566 = vmatpush3.bf16.msra.mxu0 %v4013_v15 }
 0x5d6   : > { %3567 = vmatprep.subr.bf16.mxu0 %v3895_v7 }
 0x5d8   : > { %3311 = vmatmul.mubr.msk.f32.vlgmr.msra.gmra.mrb[16].mxu0 %vm533_vm3, %v838_v25 }
 0x5d9   : > { %3569 = vmatpush3.bf16.msra.mxu0 %v4066_v59  ;;  %3321 = vmatprep.mubr.msk.f32.mxu0 %vm3896_vm2, %v3897_v8 }
 0x5da   : > { %3570 = vmatprep.subr.bf16.mxu0 %v3895_v7 }
 0x5dd   : > { %3572 = vmatpush3.bf16.msra.mxu0 %v4072_v61 }
 0x5de   : > { %3573 = vmatprep.subr.bf16.mxu0 %v3895_v7 }
 0x6a3   : > { %v4120_v27 = vpop.f32.mrb[14].mxu0 }
 0x6a4   : > { %v3301_v29 = vpop.f32.mrb[15].mxu0 }
 0x6ab   : > { %v983_v31 = vpop.f32.mrb[16].mxu0 }
 0x6ac   : > { %v987_v33 = vadd.f32 %v983_v31, %v4039_v28  ;;  %v3312_v35 = vpop.f32.mrb[17].mxu0 }
 0x6ae   : > { %v3062_v37 = vmul.f32 -1.442695, %v987_v33 }
 0x6b0   : > { %3758 = vpow2.f32 %v3062_v37 }
 0x6b1   : > { %3760 = vtanh.f32 %v987_v33 }
 0x6ba   : > { %v3759_v38 = vpop.eup %3758 }
 0x6bb   : > { %v991_v39 = vadd.f32 1.0, %v3759_v38  ;;  %v3761_v40 = vpop.eup %3760 }
 0x6bd   : > { %3762 = vrcp.f32 %v991_v39 }
 0x6c7   : > { %v3763_v41 = vpop.eup %3762 }
 0x6c8   : > { %v995_v42 = vsel %vm370_vm4, %v3763_v41, %v3761_v40 }
 0x6c9   : > { %998 = vrot.lane.b32.xlu1 %v995_v42, %s3898_s15  ;;  %v996_v46 = vmul.f32 %v995_v42, %v818_v21 }
 0x73b   : > { %v999_v43 = vpop.permute.xlu1 %998 }
 0x73c   : > { %v1001_v44 = vmul.f32 %v999_v43, %v995_v42 }
 0x73e   : > { %1003 = vrot.lane.b32.xlu0 %v1001_v44, %s3898_s15 }
 0x7b0   : > { %v1004_v28 = vpop.permute.xlu0 %1003 }
 0x7b1   : > { %v1006_v47 = vadd.f32 %v1004_v28, %v996_v46 }
 0x7b3   : > { %3764 = vtanh.f32 %v1006_v47 }
 0x7bd   : > { %v3765_v48 = vpop.eup %3764 }
 0x7be   : > { %1009 = vrot.lane.b32.xlu1 %v3765_v48, %s3898_s15 }
 0x830   : > { %v1010_v49 = vpop.permute.xlu1 %1009 }
 0x831   : > { %v1012_v50 = vmul.f32 %v1010_v49, %v995_v42 }
 0x833   : > { %1025 = vrot.lane.b32.xlu0 %v1012_v50, %s3899_s24 }
 0x8a5   : > { %v1026_v51 = vpop.permute.xlu0 %1025 }
 0x8a6   : > { %3322 = vmatmul.mubr.msk.f32.vlgmr.msra.gmra.mrb[18].mxu0 %vm533_vm3, %v1026_v51 }
 0x8a7   : > { %3575 = vmatpush3.bf16.msra.mxu0 %v3999_v10  ;;  %3332 = vmatprep.mubr.msk.f32.mxu0 %vm3896_vm2, %v3897_v8 }
 0x8a8   : > { %3576 = vmatprep.subr.bf16.mxu0 %v3895_v7 }
 0x8ab   : > { %3578 = vmatpush3.bf16.msra.mxu0 %v4013_v15 }
 0x8ac   : > { %3585 = vmatprep.subr.bf16.mxu0 %v3895_v7 }
 0x8ae   : > { %3333 = vmatmul.mubr.msk.f32.vlgmr.msra.gmra.mrb[20].mxu0 %vm533_vm3, %v1026_v51 }
 0x8af   : > { %3587 = vmatpush3.bf16.msra.mxu0 %v3999_v10  ;;  %3354 = vmatprep.mubr.msk.f32.mxu0 %vm3896_vm2, %v3897_v8 }
 0x8b0   : > { %3588 = vmatprep.subr.bf16.mxu0 %v3895_v7 }
 0x8b3   : > { %3590 = vmatpush3.bf16.msra.mxu0 %v4013_v15 }
 0x8b4   : > { %3597 = vmatprep.subr.bf16.mxu0 %v3895_v7 }
 0x979   : > { %v4143_v52 = vpop.f32.mrb[18].mxu0 }
 0x97a   : > { %v3323_v53 = vpop.f32.mrb[19].mxu0 }
 0x981   : > { %v1171_v54 = vpop.f32.mrb[20].mxu0 }
 0x982   : > { %v1175_v55 = vadd.f32 %v1171_v54, %v4037_v26  ;;  %v3334_v56 = vpop.f32.mrb[21].mxu0 }
 0x984   : > { %v3066_v57 = vmul.f32 -1.442695, %v1175_v55 }
 0x986   : > { %3766 = vpow2.f32 %v3066_v57 }
 0x987   : > { %3768 = vtanh.f32 %v1175_v55 }
 0x990   : > { %v3767_v58 = vpop.eup %3766 }
 0x991   : > { %v1179_v60 = vadd.f32 1.0, %v3767_v58  ;;  %v3769_v62 = vpop.eup %3768 }
 0x993   : > { %3770 = vrcp.f32 %v1179_v60 }
 0x99d   : > { %v3771_v63 = vpop.eup %3770 }
 0x99e   : > { %v1183_v0 = vsel %vm370_vm4, %v3771_v63, %v3769_v62 }
 0x99f   : > { %1186 = vrot.lane.b32.xlu1 %v1183_v0, %s3898_s15  ;;  %v1184_v4 = vmul.f32 %v1183_v0, %v1006_v47 }
 0xa11   : > { %v1187_v1 = vpop.permute.xlu1 %1186 }
 0xa12   : > { %v1189_v3 = vmul.f32 %v1187_v1, %v1183_v0 }
 0xa14   : > { %1191 = vrot.lane.b32.xlu0 %v1189_v3, %s3898_s15 }
 0xa86   : > { %v1192_v26 = vpop.permute.xlu0 %1191 }
 0xa87   : > { %v1194_v5 = vadd.f32 %v1192_v26, %v1184_v4 }
 0xa89   : > { %3772 = vtanh.f32 %v1194_v5 }
 0xa93   : > { %v3773_v6 = vpop.eup %3772 }
 0xa94   : > { %1197 = vrot.lane.b32.xlu1 %v3773_v6, %s3898_s15 }
 0xb06   : > { %v1198_v9 = vpop.permute.xlu1 %1197 }
 0xb07   : > { %v1200_v11 = vmul.f32 %v1198_v9, %v1183_v0 }
 0xb09   : > { %1213 = vrot.lane.b32.xlu0 %v1200_v11, %s3899_s24 }
 0xb7b   : > { %v1214_v12 = vpop.permute.xlu0 %1213 }
 0xb7c   : > { %3344 = vmatmul.mubr.msk.f32.vlgmr.msra.gmra.mrb[0].mxu1 %vm533_vm3, %v1214_v12  ;;  %3355 = vmatmul.mubr.msk.f32.vlgmr.msra.gmra.mrb[22].mxu0 %vm533_vm3, %v1214_v12 }
 0xb7d   : > { %3593 = vmatpush3.bf16.msra.mxu1 %v4066_v59  ;;  %3599 = vmatpush3.bf16.msra.mxu0 %v3999_v10 }
 0xb7e   : > { %3594 = vmatprep.subr.bf16.mxu1 %v3895_v7  ;;  %3600 = vmatprep.subr.bf16.mxu0 %v3895_v7 }
 0xb7f   : > { %3365 = vmatprep.mubr.msk.f32.mxu1 %vm3896_vm2, %v3897_v8  ;;  %3376 = vmatprep.mubr.msk.f32.mxu0 %vm3896_vm2, %v3897_v8 }
 0xb81   : > { %3596 = vmatpush3.bf16.msra.mxu1 %v4072_v61  ;;  %3602 = vmatpush3.bf16.msra.mxu0 %v4013_v15 }
 0xb82   : > { %3603 = vmatprep.subr.bf16.mxu1 %v3895_v7  ;;  %3609 = vmatprep.subr.bf16.mxu0 %v3895_v7 }
 0xc4f   : > { %v1359_v13 = vpop.f32.mrb[22].mxu0 }
 0xc50   : > { %v1363_v14 = vadd.f32 %v1359_v13, %v4043_v32  ;;  %v3356_v16 = vpop.f32.mrb[23].mxu0 }
 0xc52   : > { %v3070_v17 = vmul.f32 -1.442695, %v1363_v14 }
 0xc54   : > { %3774 = vpow2.f32 %v3070_v17 }
 0xc55   : > { %3776 = vtanh.f32 %v1363_v14 }
 0xc5e   : > { %v3775_v18 = vpop.eup %3774 }
 0xc5f   : > { %v1367_v19 = vadd.f32 1.0, %v3775_v18  ;;  %v3777_v20 = vpop.eup %3776 }
 0xc61   : > { %3778 = vrcp.f32 %v1367_v19 }
 0xc6b   : > { %v3779_v21 = vpop.eup %3778 }
 0xc6c   : > { %v1371_v22 = vsel %vm370_vm4, %v3779_v21, %v3777_v20 }
 0xc6d   : > { %1374 = vrot.lane.b32.xlu1 %v1371_v22, %s3898_s15  ;;  %v1372_v25 = vmul.f32 %v1371_v22, %v1194_v5 }
 0xcdf   : > { %v1375_v23 = vpop.permute.xlu1 %1374 }
 0xce0   : > { %v1377_v24 = vmul.f32 %v1375_v23, %v1371_v22 }
 0xce2   : > { %1379 = vrot.lane.b32.xlu0 %v1377_v24, %s3898_s15 }
 0xd54   : > { %v1380_v32 = vpop.permute.xlu0 %1379 }
 0xd55   : > { %v1382_v29 = vadd.f32 %v1380_v32, %v1372_v25 }
 0xd57   : > { %3780 = vtanh.f32 %v1382_v29 }
 0xd61   : > { %v3781_v31 = vpop.eup %3780 }
 0xd62   : > { %1385 = vrot.lane.b32.xlu1 %v3781_v31, %s3898_s15  ;;  %v2050_v31 = vld [vmem:[%s4410_s5] sm:$0xff] }
 0xdd4   : > { %v1386_v33 = vpop.permute.xlu1 %1385 }
 0xdd5   : > { %v1388_v35 = vmul.f32 %v1386_v33, %v1371_v22  ;;  %v2051_v33 = vld [vmem:[%s4410_s5 + $0x8] sm:$0xff] }
 0xdd7   : > { %1401 = vrot.lane.b32.xlu0 %v1388_v35, %s3899_s24  ;;  %v4239_v35 = vpack.c.bf16 %v2051_v33, %v2050_v31 }
 0xe49   : > { %v1402_v37 = vpop.permute.xlu0 %1401 }
 0xe4a   : > { %3366 = vmatmul.mubr.msk.f32.vlgmr.msra.gmra.mrb[2].mxu1 %vm533_vm3, %v1402_v37  ;;  %3377 = vmatmul.mubr.msk.f32.vlgmr.msra.gmra.mrb[24].mxu0 %vm533_vm3, %v1402_v37  ;;  %v2052_v37 = vld [vmem:[%s4410_s5 + $0x10] sm:$0xff] }
 0xe4b   : > { %3605 = vmatpush3.bf16.msra.mxu1 %v4066_v59  ;;  %3611 = vmatpush3.bf16.msra.mxu0 %v3999_v10 }
 0xe4c   : > { %3606 = vmatprep.subr.bf16.mxu1 %v3895_v7  ;;  %3612 = vmatprep.subr.bf16.mxu0 %v3895_v7 }
 0xe4d   : > { %3387 = vmatprep.mubr.msk.f32.mxu1 %vm3896_vm2, %v3897_v8  ;;  %3398 = vmatprep.mubr.msk.f32.mxu0 %vm3896_vm2, %v3897_v8 }
 0xe4f   : > { %3608 = vmatpush3.bf16.msra.mxu1 %v4072_v61  ;;  %3614 = vmatpush3.bf16.msra.mxu0 %v4013_v15 }
 0xe50   : > { %3615 = vmatprep.subr.bf16.mxu1 %v3895_v7  ;;  %3621 = vmatprep.subr.bf16.mxu0 %v3895_v7 }
 0xf1d   : > { %v1547_v38 = vpop.f32.mrb[24].mxu0 }
 0xf1e   : > { %v1551_v39 = vadd.f32 %v1547_v38, %v4041_v30  ;;  %v3378_v40 = vpop.f32.mrb[25].mxu0  ;;  %v2053_v38 = vld [vmem:[%s4410_s5 + $0x18] sm:$0xff] }
 0xf1f   : > { %v4250_v40 = vpack.c.bf16 %v2053_v38, %v2052_v37 }
 0xf20   : > { %v3074_v41 = vmul.f32 -1.442695, %v1551_v39 }
 0xf22   : > { %3782 = vpow2.f32 %v3074_v41  ;;  %v2047_v41 = vld [vmem:[#allocation4] sm:$0xff] }
 0xf23   : > { %3784 = vtanh.f32 %v1551_v39 }
 0xf2c   : > { %v3783_v42 = vpop.eup %3782 }
 0xf2d   : > { %v1555_v43 = vadd.f32 1.0, %v3783_v42  ;;  %v3785_v44 = vpop.eup %3784  ;;  %v4267_v42 = vld [vmem:[%s4411_s6] ss:$0 sm:$0xff] }
 0xf2f   : > { %3786 = vrcp.f32 %v1555_v43  ;;  %v720_v43 = vadd.f32 %v4267_v42, %v4097_v2 }
 0xf39   : > { %v3787_v46 = vpop.eup %3786 }
 0xf3a   : > { %v1559_v28 = vsel %vm370_vm4, %v3787_v46, %v3785_v44 }
 0xf3b   : > { %1562 = vrot.lane.b32.xlu1 %v1559_v28, %s3898_s15  ;;  %v1560_v49 = vmul.f32 %v1559_v28, %v1382_v29  ;;  %v2048_v29 = vld [vmem:[#allocation6] sm:$0xff] }
 0xfad   : > { %v1563_v47 = vpop.permute.xlu1 %1562 }
 0xfae   : > { %v1565_v48 = vmul.f32 %v1563_v47, %v1559_v28 }
 0xfb0   : > { %1567 = vrot.lane.b32.xlu0 %v1565_v48, %s3898_s15 }
0x1022   : > { %v1568_v30 = vpop.permute.xlu0 %1567 }
0x1023   : > { %v1570_v50 = vadd.f32 %v1568_v30, %v1560_v49 }
0x1025   : > { %3788 = vtanh.f32 %v1570_v50 }
0x102f   : > { %v3789_v51 = vpop.eup %3788 }
0x1030   : > { %1573 = vrot.lane.b32.xlu1 %v3789_v51, %s3898_s15 }
0x10a2   : > { %v1574_v53 = vpop.permute.xlu1 %1573 }
0x10a3   : > { %v1576_v54 = vmul.f32 %v1574_v53, %v1559_v28 }
0x10a5   : > { %1589 = vrot.lane.b32.xlu0 %v1576_v54, %s3899_s24 }
0x1117   : > { %v1590_v55 = vpop.permute.xlu0 %1589 }
0x1118   : > { %3388 = vmatmul.mubr.msk.f32.vlgmr.msra.gmra.mrb[4].mxu1 %vm533_vm3, %v1590_v55  ;;  %3399 = vmatmul.mubr.msk.f32.vlgmr.msra.gmra.mrb[26].mxu0 %vm533_vm3, %v1590_v55 }
0x1119   : > { %3617 = vmatpush3.bf16.msra.mxu1 %v4066_v59  ;;  %3623 = vmatpush3.bf16.msra.mxu0 %v3999_v10 }
0x111a   : > { %3618 = vmatprep.subr.bf16.mxu1 %v3895_v7  ;;  %3624 = vmatprep.subr.bf16.mxu0 %v3895_v7 }
0x111b   : > { %3409 = vmatprep.mubr.msk.f32.mxu1 %vm3896_vm2, %v3897_v8  ;;  %3420 = vmatprep.mubr.msk.f32.mxu0 %vm3896_vm2, %v3897_v8 }
0x111d   : > { %3620 = vmatpush3.bf16.msra.mxu1 %v4072_v61  ;;  %3626 = vmatpush3.bf16.msra.mxu0 %v4013_v15 }
0x111e   : > { %3627 = vmatprep.subr.bf16.mxu1 %v3895_v7 }
0x11eb   : > { %v1735_v56 = vpop.f32.mrb[26].mxu0 }
0x11ec   : > { %v1739_v57 = vadd.f32 %v1735_v56, %v4047_v36  ;;  %v3400_v10 = vpop.f32.mrb[27].mxu0 }
0x11ee   : > { %v3078_v58 = vmul.f32 -1.442695, %v1739_v57 }
0x11f0   : > { %3790 = vpow2.f32 %v3078_v58 }
0x11f1   : > { %3792 = vtanh.f32 %v1739_v57 }
0x11fa   : > { %v3791_v60 = vpop.eup %3790 }
0x11fb   : > { %v1743_v62 = vadd.f32 1.0, %v3791_v60  ;;  %v3793_v63 = vpop.eup %3792 }
0x11fd   : > { %3794 = vrcp.f32 %v1743_v62 }
0x1207   : > { %v3795_v0 = vpop.eup %3794 }
0x1208   : > { %v1747_v1 = vsel %vm370_vm4, %v3795_v0, %v3793_v63  ;;  %v908_v63 = vadd.f32 %v4267_v42, %v4120_v27 }
0x1209   : > { %1750 = vrot.lane.b32.xlu1 %v1747_v1, %s3898_s15  ;;  %v1748_v4 = vmul.f32 %v1747_v1, %v1570_v50 }
0x127b   : > { %v1751_v15 = vpop.permute.xlu1 %1750 }
0x127c   : > { %v1753_v3 = vmul.f32 %v1751_v15, %v1747_v1 }
0x127e   : > { %1755 = vrot.lane.b32.xlu0 %v1753_v3, %s3898_s15 }
0x12f0   : > { %v1756_v36 = vpop.permute.xlu0 %1755 }
0x12f1   : > { %v1758_v26 = vadd.f32 %v1756_v36, %v1748_v4 }
0x12f3   : > { %3796 = vtanh.f32 %v1758_v26 }
0x12fd   : > { %v3797_v5 = vpop.eup %3796 }
0x12fe   : > { %1761 = vrot.lane.b32.xlu1 %v3797_v5, %s3898_s15 }
0x1370   : > { %v1762_v6 = vpop.permute.xlu1 %1761 }
0x1371   : > { %v1764_v9 = vmul.f32 %v1762_v6, %v1747_v1 }
0x1373   : > { %1777 = vrot.lane.b32.xlu0 %v1764_v9, %s3899_s24 }
0x13e5   : > { %v1778_v11 = vpop.permute.xlu0 %1777 }
0x13e6   : > { %3410 = vmatmul.mubr.msk.f32.vlgmr.msra.gmra.mrb[6].mxu1 %vm533_vm3, %v1778_v11  ;;  %3421 = vmatmul.mubr.msk.f32.vlgmr.msra.gmra.mrb[28].mxu0 %vm533_vm3, %v1778_v11 }
0x13e7   : > { %3629 = vmatpush3.bf16.msra.mxu1 %v4066_v59  ;;  %3431 = vmatprep.mubr.msk.f32.mxu1 %vm3896_vm2, %v3897_v8 }
0x13e8   : > { %3630 = vmatprep.subr.bf16.mxu1 %v3895_v7 }
0x13eb   : > { %3632 = vmatpush3.bf16.msra.mxu1 %v4072_v61 }
0x13ec   : > { %3633 = vmatprep.subr.bf16.mxu1 %v3895_v7 }
0x14b9   : > { %v1923_v12 = vpop.f32.mrb[28].mxu0 }
0x14ba   : > { %v1927_v13 = vadd.f32 %v1923_v12, %v4045_v34  ;;  %v3422_v14 = vpop.f32.mrb[29].mxu0 }
0x14bc   : > { %v3082_v16 = vmul.f32 -1.442695, %v1927_v13 }
0x14be   : > { %3798 = vpow2.f32 %v3082_v16 }
0x14bf   : > { %3800 = vtanh.f32 %v1927_v13 }
0x14c8   : > { %v3799_v17 = vpop.eup %3798 }
0x14c9   : > { %v1931_v18 = vadd.f32 1.0, %v3799_v17  ;;  %v3801_v59 = vpop.eup %3800 }
0x14cb   : > { %3802 = vrcp.f32 %v1931_v18 }
0x14d5   : > { %v3803_v19 = vpop.eup %3802 }
0x14d6   : > { %v1935_v20 = vsel %vm370_vm4, %v3803_v19, %v3801_v59  ;;  %v1096_v59 = vadd.f32 %v4267_v42, %v4143_v52 }
0x14d7   : > { %1938 = vrot.lane.b32.xlu1 %v1935_v20, %s3898_s15  ;;  %v1936_v22 = vmul.f32 %v1935_v20, %v1758_v26 }
0x1549   : > { %v1939_v61 = vpop.permute.xlu1 %1938 }
0x154a   : > { %v1941_v21 = vmul.f32 %v1939_v61, %v1935_v20 }
0x154c   : > { %1943 = vrot.lane.b32.xlu0 %v1941_v21, %s3898_s15 }
0x15be   : > { %v1944_v34 = vpop.permute.xlu0 %1943 }
0x15bf   : > { %v4227_v23 = vadd.f32 %v1944_v34, %v1936_v22 }
0x15c1   : > { %3804 = vtanh.f32 %v4227_v23 }
0x15cb   : > { %v3805_v24 = vpop.eup %3804 }
0x15cc   : > { %1949 = vrot.lane.b32.xlu1 %v3805_v24, %s3898_s15 }
0x163e   : > { %v1950_v25 = vpop.permute.xlu1 %1949 }
0x163f   : > { %v1952_v32 = vmul.f32 %v1950_v25, %v1935_v20 }
0x1641   : > { %1965 = vrot.lane.b32.xlu0 %v1952_v32, %s3899_s24 }
0x1645   : > { %2137 = vrot.lane.b32.xlu0 %v2048_v29, %s3898_s15 }
0x16b3   : > { %v1966_v39 = vpop.permute.xlu0 %1965 }
0x16b4   : > { %2041 = vst.msk [vmem:[#allocation3] sm:$0xff] %vm533_vm3, %v1966_v39  ;;  %3432 = vmatmul.mubr.msk.f32.vlgmr.msra.gmra.mrb[8].mxu1 %vm533_vm3, %v1966_v39 }
0x16b5   : > { %3635 = vmatpush3.bf16.msra.mxu1 %v4239_v35  ;;  %3442 = vmatprep.mubr.msk.f32.mxu1 %vm3896_vm2, %v3897_v8 }
0x16b6   : > { %3636 = vmatprep.subr.bf16.mxu1 %v3895_v7 }
0x16b7   : > { %v2138_v2 = vpop.permute.xlu0 %2137 }
0x16b9   : > { %3638 = vmatpush3.bf16.msra.mxu1 %v4250_v40 }
0x16ba   : > { %3639 = vmatprep.subr.bf16.mxu1 %v3895_v7 }
0x16bc   : > { %3443 = vmatmul.mubr.msk.f32.vlgmr.msra.gmra.mrb[10].mxu1 %vm533_vm3, %v2047_v41 }
0x16bd   : > { %3641 = vmatpush3.bf16.msra.mxu1 %v4239_v35  ;;  %3453 = vmatprep.mubr.msk.f32.mxu1 %vm3896_vm2, %v3897_v8 }
0x16be   : > { %3642 = vmatprep.subr.bf16.mxu1 %v3895_v7 }
0x16c1   : > { %3644 = vmatpush3.bf16.msra.mxu1 %v4250_v40 }
0x16c2   : > { %3645 = vmatprep.subr.bf16.mxu1 %v3895_v7 }
0x178f   : > { %v2123_v44 = vpop.f32.mrb[10].mxu1 }
0x1790   : > { %v2127_v46 = vadd.f32 %v2123_v44, %v720_v43  ;;  %v3444_v28 = vpop.f32.mrb[11].mxu1 }
0x1792   : > { %v3086_v47 = vmul.f32 -1.442695, %v2127_v46 }
0x1794   : > { %3806 = vpow2.f32 %v3086_v47 }
0x1795   : > { %3808 = vtanh.f32 %v2127_v46 }
0x179e   : > { %v3807_v48 = vpop.eup %3806 }
0x179f   : > { %v2131_v49 = vadd.f32 1.0, %v3807_v48  ;;  %v3809_v30 = vpop.eup %3808 }
0x17a1   : > { %3810 = vrcp.f32 %v2131_v49 }
0x17ab   : > { %v3811_v50 = vpop.eup %3810 }
0x17ac   : > { %v2135_v51 = vsel %vm370_vm4, %v3811_v50, %v3809_v30 }
0x17ad   : > { %2142 = vrot.lane.b32.xlu1 %v2135_v51, %s3898_s15  ;;  %v2140_v55 = vmul.f32 %v2138_v2, %v2135_v51 }
0x181f   : > { %v2143_v53 = vpop.permute.xlu1 %2142 }
0x1820   : > { %v2145_v54 = vmul.f32 %v2143_v53, %v2135_v51 }
0x1822   : > { %2147 = vrot.lane.b32.xlu1 %v2145_v54, %s3898_s15 }
0x1894   : > { %v2148_v56 = vpop.permute.xlu1 %2147 }
0x1895   : > { %v2150_v57 = vadd.f32 %v2148_v56, %v2140_v55 }
0x1897   : > { %3812 = vtanh.f32 %v2150_v57 }
0x18a1   : > { %v3813_v10 = vpop.eup %3812 }
0x18a2   : > { %2153 = vrot.lane.b32.xlu0 %v3813_v10, %s3898_s15 }
0x1914   : > { %v2154_v58 = vpop.permute.xlu0 %2153 }
0x1915   : > { %v2156_v60 = vmul.f32 %v2154_v58, %v2135_v51 }
0x1917   : > { %2159 = vrot.lane.b32.xlu1 %v2156_v60, %s3899_s24 }
0x1989   : > { %v2160_v62 = vpop.permute.xlu1 %2159 }
0x198a   : > { %3454 = vmatmul.mubr.msk.f32.vlgmr.msra.gmra.mrb[12].mxu1 %vm533_vm3, %v2160_v62 }
0x198b   : > { %3647 = vmatpush3.bf16.msra.mxu1 %v4239_v35  ;;  %3464 = vmatprep.mubr.msk.f32.mxu1 %vm3896_vm2, %v3897_v8 }
0x198c   : > { %3648 = vmatprep.subr.bf16.mxu1 %v3895_v7 }
0x198f   : > { %3650 = vmatpush3.bf16.msra.mxu1 %v4250_v40 }
0x1990   : > { %3651 = vmatprep.subr.bf16.mxu1 %v3895_v7 }
0x1a5d   : > { %v2229_v0 = vpop.f32.mrb[12].mxu1 }
0x1a5e   : > { %v2233_v1 = vadd.f32 %v2229_v0, %v908_v63  ;;  %v3455_v15 = vpop.f32.mrb[13].mxu1 }
0x1a60   : > { %v3088_v3 = vmul.f32 -1.442695, %v2233_v1 }
0x1a62   : > { %3814 = vpow2.f32 %v3088_v3 }
0x1a63   : > { %3816 = vtanh.f32 %v2233_v1 }
0x1a6c   : > { %v3815_v4 = vpop.eup %3814 }
0x1a6d   : > { %v2237_v36 = vadd.f32 1.0, %v3815_v4  ;;  %v3817_v26 = vpop.eup %3816 }
0x1a6f   : > { %3818 = vrcp.f32 %v2237_v36 }
0x1a79   : > { %v3819_v5 = vpop.eup %3818 }
0x1a7a   : > { %v2241_v6 = vsel %vm370_vm4, %v3819_v5, %v3817_v26 }
0x1a7b   : > { %2244 = vrot.lane.b32.xlu0 %v2241_v6, %s3898_s15  ;;  %v2242_v27 = vmul.f32 %v2241_v6, %v2150_v57 }
0x1aed   : > { %v2245_v9 = vpop.permute.xlu0 %2244 }
0x1aee   : > { %v2247_v11 = vmul.f32 %v2245_v9, %v2241_v6 }
0x1af0   : > { %2249 = vrot.lane.b32.xlu1 %v2247_v11, %s3898_s15 }
0x1b62   : > { %v2250_v12 = vpop.permute.xlu1 %2249 }
0x1b63   : > { %v2252_v13 = vadd.f32 %v2250_v12, %v2242_v27 }
0x1b65   : > { %3820 = vtanh.f32 %v2252_v13 }
0x1b6f   : > { %v3821_v14 = vpop.eup %3820 }
0x1b70   : > { %2255 = vrot.lane.b32.xlu0 %v3821_v14, %s3898_s15 }
0x1be2   : > { %v2256_v16 = vpop.permute.xlu0 %2255 }
0x1be3   : > { %v2258_v17 = vmul.f32 %v2256_v16, %v2241_v6 }
0x1be5   : > { %2261 = vrot.lane.b32.xlu1 %v2258_v17, %s3899_s24 }
0x1c57   : > { %v2262_v18 = vpop.permute.xlu1 %2261 }
0x1c58   : > { %3465 = vmatmul.mubr.msk.f32.vlgmr.msra.gmra.mrb[14].mxu1 %vm533_vm3, %v2262_v18 }
0x1c59   : > { %3653 = vmatpush3.bf16.msra.mxu1 %v4239_v35  ;;  %3475 = vmatprep.mubr.msk.f32.mxu1 %vm3896_vm2, %v3897_v8 }
0x1c5a   : > { %3654 = vmatprep.subr.bf16.mxu1 %v3895_v7 }
0x1c5d   : > { %3656 = vmatpush3.bf16.msra.mxu1 %v4250_v40 }
0x1c5e   : > { %3657 = vmatprep.subr.bf16.mxu1 %v3895_v7 }
0x1d2b   : > { %v2331_v19 = vpop.f32.mrb[14].mxu1 }
0x1d2c   : > { %v2335_v20 = vadd.f32 %v2331_v19, %v1096_v59  ;;  %v3466_v61 = vpop.f32.mrb[15].mxu1 }
0x1d2e   : > { %v3090_v21 = vmul.f32 -1.442695, %v2335_v20 }
0x1d30   : > { %3822 = vpow2.f32 %v3090_v21 }
0x1d31   : > { %3824 = vtanh.f32 %v2335_v20 }
0x1d3a   : > { %v3823_v22 = vpop.eup %3822 }
0x1d3b   : > { %v2339_v34 = vadd.f32 1.0, %v3823_v22  ;;  %v3825_v24 = vpop.eup %3824 }
0x1d3d   : > { %3826 = vrcp.f32 %v2339_v34 }
0x1d47   : > { %v3827_v25 = vpop.eup %3826 }
0x1d48   : > { %v2343_v32 = vsel %vm370_vm4, %v3827_v25, %v3825_v24 }
0x1d49   : > { %2346 = vrot.lane.b32.xlu0 %v2343_v32, %s3898_s15  ;;  %v2344_v52 = vmul.f32 %v2343_v32, %v2252_v13 }
0x1dbb   : > { %v2347_v29 = vpop.permute.xlu0 %2346 }
0x1dbc   : > { %v2349_v31 = vmul.f32 %v2347_v29, %v2343_v32 }
0x1dbe   : > { %2351 = vrot.lane.b32.xlu1 %v2349_v31, %s3898_s15 }
0x1e30   : > { %v2352_v33 = vpop.permute.xlu1 %2351 }
0x1e31   : > { %v2354_v37 = vadd.f32 %v2352_v33, %v2344_v52 }
0x1e33   : > { %3828 = vtanh.f32 %v2354_v37 }
0x1e3d   : > { %v3829_v38 = vpop.eup %3828 }
0x1e3e   : > { %2357 = vrot.lane.b32.xlu0 %v3829_v38, %s3898_s15 }
0x1eb0   : > { %v2358_v39 = vpop.permute.xlu0 %2357 }
0x1eb1   : > { %v2360_v41 = vmul.f32 %v2358_v39, %v2343_v32 }
0x1eb3   : > { %2363 = vrot.lane.b32.xlu1 %v2360_v41, %s3899_s24 }
0x1f25   : > { %v2364_v43 = vpop.permute.xlu1 %2363 }
0x1f26   : > { %3476 = vmatmul.mubr.msk.f32.vlgmr.msra.gmra.mrb[0].mxu1 %vm533_vm3, %v2364_v43 }
0x1f27   : > { %3659 = vmatpush3.bf16.msra.mxu1 %v4239_v35  ;;  %3486 = vmatprep.mubr.msk.f32.mxu1 %vm3896_vm2, %v3897_v8 }
0x1f28   : > { %3660 = vmatprep.subr.bf16.mxu1 %v3895_v7 }
0x1f2b   : > { %3662 = vmatpush3.bf16.msra.mxu1 %v4250_v40 }
0x1f2c   : > { %3663 = vmatprep.subr.bf16.mxu1 %v3895_v7 }
0x1ff9   : > { %v2433_v44 = vpop.f32.mrb[0].mxu1 }
0x1ffa   : > { %v3693_v46 = vadd.f32 %v4267_v42, %v2433_v44  ;;  %v3477_v28 = vpop.f32.mrb[1].mxu1 }
0x1ffc   : > { %v3092_v47 = vmul.f32 -1.442695, %v3693_v46 }
0x1ffe   : > { %3830 = vpow2.f32 %v3092_v47 }
0x1fff   : > { %3832 = vtanh.f32 %v3693_v46 }
0x2008   : > { %v3831_v48 = vpop.eup %3830 }
0x2009   : > { %v2441_v49 = vadd.f32 1.0, %v3831_v48  ;;  %v3833_v30 = vpop.eup %3832 }
0x200b   : > { %3834 = vrcp.f32 %v2441_v49 }
0x2015   : > { %v3835_v50 = vpop.eup %3834 }
0x2016   : > { %v2445_v51 = vsel %vm370_vm4, %v3835_v50, %v3833_v30 }
0x2017   : > { %2448 = vrot.lane.b32.xlu0 %v2445_v51, %s3898_s15  ;;  %v2446_v2 = vmul.f32 %v2445_v51, %v2354_v37 }
0x2089   : > { %v2449_v53 = vpop.permute.xlu0 %2448 }
0x208a   : > { %v2451_v54 = vmul.f32 %v2449_v53, %v2445_v51 }
0x208c   : > { %2453 = vrot.lane.b32.xlu1 %v2451_v54, %s3898_s15  ;;  %v3083_v54 = vld [vmem:[%s4411_s6] ss:$0 sm:$0xff] }
0x20fe   : > { %v2454_v55 = vpop.permute.xlu1 %2453 }
0x20ff   : > { %v2456_v56 = vadd.f32 %v2454_v55, %v2446_v2 }
0x2101   : > { %3836 = vtanh.f32 %v2456_v56 }
0x210b   : > { %v3837_v57 = vpop.eup %3836 }
0x210c   : > { %2459 = vrot.lane.b32.xlu0 %v3837_v57, %s3898_s15 }
0x217e   : > { %v2460_v10 = vpop.permute.xlu0 %2459 }
0x217f   : > { %v2462_v58 = vmul.f32 %v2460_v10, %v2445_v51 }
0x2181   : > { %2465 = vrot.lane.b32.xlu1 %v2462_v58, %s3899_s24 }
0x21f3   : > { %v2466_v60 = vpop.permute.xlu1 %2465 }
0x21f4   : > { %3487 = vmatmul.mubr.msk.f32.vlgmr.msra.gmra.mrb[2].mxu1 %vm533_vm3, %v2466_v60 }
0x21f5   : > { %3665 = vmatpush3.bf16.msra.mxu1 %v4239_v35  ;;  %3497 = vmatprep.mubr.msk.f32.mxu1 %vm3896_vm2, %v3897_v8 }
0x21f6   : > { %3666 = vmatprep.subr.bf16.mxu1 %v3895_v7 }
0x21f9   : > { %3668 = vmatpush3.bf16.msra.mxu1 %v4250_v40 }
0x21fa   : > { %3669 = vmatprep.subr.bf16.mxu1 %v3895_v7 }
0x22c7   : > { %v2535_v62 = vpop.f32.mrb[2].mxu1 }
0x22c8   : > { %v3694_v63 = vadd.f32 %v4267_v42, %v2535_v62  ;;  %v3488_v0 = vpop.f32.mrb[3].mxu1 }
0x22ca   : > { %v3094_v1 = vmul.f32 -1.442695, %v3694_v63 }
0x22cc   : > { %3838 = vpow2.f32 %v3094_v1 }
0x22cd   : > { %3840 = vtanh.f32 %v3694_v63 }
0x22d6   : > { %v3839_v15 = vpop.eup %3838 }
0x22d7   : > { %v2543_v3 = vadd.f32 1.0, %v3839_v15  ;;  %v3841_v4 = vpop.eup %3840 }
0x22d9   : > { %3842 = vrcp.f32 %v2543_v3 }
0x22e3   : > { %v3843_v36 = vpop.eup %3842 }
0x22e4   : > { %v2547_v26 = vsel %vm370_vm4, %v3843_v36, %v3841_v4 }
0x22e5   : > { %2550 = vrot.lane.b32.xlu0 %v2547_v26, %s3898_s15  ;;  %v2548_v9 = vmul.f32 %v2547_v26, %v2456_v56 }
0x2357   : > { %v2551_v5 = vpop.permute.xlu0 %2550 }
0x2358   : > { %v2553_v6 = vmul.f32 %v2551_v5, %v2547_v26 }
0x235a   : > { %2555 = vrot.lane.b32.xlu1 %v2553_v6, %s3898_s15 }
0x23cc   : > { %v2556_v11 = vpop.permute.xlu1 %2555 }
0x23cd   : > { %v2558_v27 = vadd.f32 %v2556_v11, %v2548_v9  ;;  %v2887_v11 = vld [vmem:[%s4412_s7 + $0x8] sm:$0xff] (!%p3101_p6) }
0x23cf   : > { %3844 = vtanh.f32 %v2558_v27 }
0x23d9   : > { %v3845_v12 = vpop.eup %3844 }
0x23da   : > { %2561 = vrot.lane.b32.xlu0 %v3845_v12, %s3898_s15  ;;  %v3901_v12 = vmov (!%p3101_p6), 0.0|0.0  }
0x23db   : > { %3681 = vmatprep.subr.bf16.mxu0 (!%p3101_p6), %v3901_v12 }
0x244c   : > { %v2562_v13 = vpop.permute.xlu0 %2561 }
0x244d   : > { %v2564_v14 = vmul.f32 %v2562_v13, %v2547_v26 }
0x244f   : > { %2567 = vrot.lane.b32.xlu1 %v2564_v14, %s3899_s24  ;;  %v2889_v14 = vld [vmem:[%s4412_s7 + $0x18] sm:$0xff] (!%p3101_p6) }
0x24c1   : > { %v2568_v16 = vpop.permute.xlu1 %2567 }
0x24c2   : > { %3498 = vmatmul.mubr.msk.f32.vlgmr.msra.gmra.mrb[4].mxu1 %vm533_vm3, %v2568_v16  ;;  %v3903_v16 = vmov (!%p3101_p6), 0.0  }
0x24c3   : > { %3671 = vmatpush3.bf16.msra.mxu1 %v4239_v35  ;;  %3508 = vmatprep.mubr.msk.f32.mxu1 %vm3896_vm2, %v3897_v8 }
0x24c4   : > { %3672 = vmatprep.subr.bf16.mxu1 %v3895_v7  ;;  %3530 = vmatprep.mubr.msk.f32.mxu0 (!%p3101_p6), %vm3902_vm5, %v3903_v16 }
0x24c7   : > { %3674 = vmatpush3.bf16.msra.mxu1 %v4250_v40 }
0x24c8   : > { %3675 = vmatprep.subr.bf16.mxu1 %v3895_v7 }
0x2595   : > { %v2637_v17 = vpop.f32.mrb[4].mxu1 }
0x2596   : > { %v3695_v18 = vadd.f32 %v4267_v42, %v2637_v17  ;;  %v3499_v59 = vpop.f32.mrb[5].mxu1 }
0x2597   : > { %v3102_v59 = vld [vmem:[%s4413_s8] ss:$0 sm:$0xff] (!%p3101_p6) }
0x2598   : > { %v3096_v19 = vmul.f32 -1.442695, %v3695_v18 }
0x259a   : > { %3846 = vpow2.f32 %v3096_v19 }
0x259b   : > { %3848 = vtanh.f32 %v3695_v18 }
0x25a4   : > { %v3847_v20 = vpop.eup %3846 }
0x25a5   : > { %v2645_v61 = vadd.f32 1.0, %v3847_v20  ;;  %v3849_v21 = vpop.eup %3848 }
0x25a7   : > { %3850 = vrcp.f32 %v2645_v61 }
0x25b1   : > { %v3851_v22 = vpop.eup %3850 }
0x25b2   : > { %v2649_v34 = vsel %vm370_vm4, %v3851_v22, %v3849_v21 }
0x25b3   : > { %2652 = vrot.lane.b32.xlu0 %v2649_v34, %s3898_s15  ;;  %v2650_v32 = vmul.f32 %v2649_v34, %v2558_v27  ;;  %v2888_v27 = vld [vmem:[%s4412_s7 + $0x10] sm:$0xff] (!%p3101_p6) }
0x25b4   : > { %v3685_v17 = vpack.c.bf16 (!%p3101_p6), %v2889_v14, %v2888_v27 }
0x2625   : > { %v2653_v24 = vpop.permute.xlu0 %2652 }
0x2626   : > { %v2655_v25 = vmul.f32 %v2653_v24, %v2649_v34 }
0x2628   : > { %2657 = vrot.lane.b32.xlu1 %v2655_v25, %s3898_s15 }
0x269a   : > { %v2658_v29 = vpop.permute.xlu1 %2657 }
0x269b   : > { %v2660_v31 = vadd.f32 %v2658_v29, %v2650_v32 }
0x269d   : > { %3852 = vtanh.f32 %v2660_v31 }
0x26a7   : > { %v3853_v52 = vpop.eup %3852 }
0x26a8   : > { %2663 = vrot.lane.b32.xlu0 %v3853_v52, %s3898_s15 }
0x271a   : > { %v2664_v33 = vpop.permute.xlu0 %2663 }
0x271b   : > { %v2666_v37 = vmul.f32 %v2664_v33, %v2649_v34 }
0x271d   : > { %2669 = vrot.lane.b32.xlu1 %v2666_v37, %s3899_s24 }
0x278f   : > { %v2670_v38 = vpop.permute.xlu1 %2669 }
0x2790   : > { %3509 = vmatmul.mubr.msk.f32.vlgmr.msra.gmra.mrb[6].mxu1 %vm533_vm3, %v2670_v38 }
0x2791   : > { %3677 = vmatpush3.bf16.msra.mxu1 %v4239_v35  ;;  %3519 = vmatprep.mubr.msk.f32.mxu1 %vm3896_vm2, %v3897_v8 }
0x2792   : > { %3678 = vmatprep.subr.bf16.mxu1 %v3895_v7 }
0x2795   : > { %3680 = vmatpush3.bf16.msra.mxu1 %v4250_v40 }
0x2863   : > { %v2739_v39 = vpop.f32.mrb[6].mxu1 }
0x2864   : > { %v3696_v41 = vadd.f32 %v4267_v42, %v2739_v39  ;;  %v3510_v43 = vpop.f32.mrb[7].mxu1 }
0x2866   : > { %v3098_v44 = vmul.f32 -1.442695, %v3696_v41 }
0x2868   : > { %3854 = vpow2.f32 %v3098_v44 }
0x2869   : > { %3856 = vtanh.f32 %v3696_v41 }
0x2872   : > { %v3855_v46 = vpop.eup %3854 }
0x2873   : > { %v2747_v28 = vadd.f32 1.0, %v3855_v46  ;;  %v3857_v47 = vpop.eup %3856 }
0x2875   : > { %3858 = vrcp.f32 %v2747_v28 }
0x287f   : > { %v3859_v48 = vpop.eup %3858 }
0x2880   : > { %v2751_v35 = vsel %vm370_vm4, %v3859_v48, %v3857_v47 }
0x2881   : > { %2754 = vrot.lane.b32.xlu0 %v2751_v35, %s3898_s15  ;;  %v2752_v40 = vmul.f32 %v2751_v35, %v2660_v31 }
0x28f3   : > { %v2755_v7 = vpop.permute.xlu0 %2754 }
0x28f4   : > { %v2757_v8 = vmul.f32 %v2755_v7, %v2751_v35 }
0x28f6   : > { %2759 = vrot.lane.b32.xlu1 %v2757_v8, %s3898_s15 }
0x2968   : > { %v2760_v42 = vpop.permute.xlu1 %2759 }
0x2969   : > { %v2762_v49 = vadd.f32 %v2760_v42, %v2752_v40 }
0x296b   : > { %3860 = vtanh.f32 %v2762_v49 }
0x2975   : > { %v3861_v30 = vpop.eup %3860 }
0x2976   : > { %2765 = vrot.lane.b32.xlu0 %v3861_v30, %s3898_s15 }
0x29e8   : > { %v2766_v50 = vpop.permute.xlu0 %2765 }
0x29e9   : > { %v2768_v51 = vmul.f32 %v2766_v50, %v2751_v35 }
0x29eb   : > { %2771 = vrot.lane.b32.xlu1 %v2768_v51, %s3899_s24 }
0x2a5d   : > { %v2772_v53 = vpop.permute.xlu1 %2771 }
0x2a5e   : > { %3520 = vmatmul.mubr.msk.f32.vlgmr.msra.gmra.mrb[8].mxu1 %vm533_vm3, %v2772_v53 }
0x2b31   : > { %v2841_v2 = vpop.f32.mrb[8].mxu1 }
0x2b32   : > { %v3697_v55 = vadd.f32 %v3083_v54, %v2841_v2  ;;  %v3521_v56 = vpop.f32.mrb[9].mxu1 }
0x2b34   : > { %v3100_v57 = vmul.f32 -1.442695, %v3697_v55 }
0x2b36   : > { %3862 = vpow2.f32 %v3100_v57 }
0x2b37   : > { %3864 = vtanh.f32 %v3697_v55 }
0x2b40   : > { %v3863_v10 = vpop.eup %3862 }
0x2b41   : > { %v2849_v58 = vadd.f32 1.0, %v3863_v10  ;;  %v3865_v60 = vpop.eup %3864 }
0x2b43   : > { %3866 = vrcp.f32 %v2849_v58 }
0x2b4d   : > { %v3867_v62 = vpop.eup %3866 }
0x2b4e   : > { %v2853_v63 = vsel %vm370_vm4, %v3867_v62, %v3865_v60 }
0x2b4f   : > { %2856 = vrot.lane.b32.xlu0 %v2853_v63, %s3898_s15  ;;  %v2854_v15 = vmul.f32 %v2853_v63, %v2762_v49 }
0x2bc1   : > { %v2857_v0 = vpop.permute.xlu0 %2856 }
0x2bc2   : > { %v2859_v1 = vmul.f32 %v2857_v0, %v2853_v63 }
0x2bc4   : > { %2861 = vrot.lane.b32.xlu1 %v2859_v1, %s3898_s15 }
0x2bc8   : > { %2043 = vrot.lane.b32.xlu1 %v4227_v23, %s3900_s21  ;;  %v2886_v23 = vld [vmem:[%s4412_s7] sm:$0xff] (!%p3101_p6) }
0x2bc9   : > { %v3682_v13 = vpack.c.bf16 (!%p3101_p6), %v2887_v11, %v2886_v23 }
0x2bcb   : > { %3683 = vmatpush3.bf16.msra.mxu0 (!%p3101_p6), %v3682_v13 }
0x2bcc   : > { %3684 = vmatprep.subr.bf16.mxu0 (!%p3101_p6), %v3901_v12 }
0x2bcf   : > { %3686 = vmatpush3.bf16.msra.mxu0 (!%p3101_p6), %v3685_v17 }
0x2c36   : > { %v2862_v3 = vpop.permute.xlu1 %2861 }
0x2c37   : > { %v2864_v4 = vadd.f32 %v2862_v3, %v2854_v15 }
0x2c39   : > { %3868 = vtanh.f32 %v2864_v4  ;;  %2877 = vrot.lane.b32.xlu1 %v2864_v4, %s3900_s21 }
0x2c3a   : > { %v2044_v36 = vpop.permute.xlu1 %2043 }
0x2c3b   : > { %2046 = vst.msk [vmem:[#allocation5] sm:$0xff] %vm533_vm3, %v2044_v36 }
0x2c43   : > { %v3869_v26 = vpop.eup %3868 }
0x2c44   : > { %2867 = vrot.lane.b32.xlu0 %v3869_v26, %s3898_s15 }
0x2cab   : > { %v2878_v45 = vpop.permute.xlu1 %2877 }
0x2cac   : > { %2880 = vst.msk [vmem:[#allocation6] sm:$0xff] %vm533_vm3, %v2878_v45 }
0x2cb6   : > { %v2868_v5 = vpop.permute.xlu0 %2867 }
0x2cb7   : > { %v2870_v6 = vmul.f32 %v2868_v5, %v2853_v63 }
0x2cb9   : > { %2872 = vrot.lane.b32.xlu0 %v2870_v6, %s3899_s24 }
0x2d26   : > { %2884 = sbr.rel (%p3101_p6) target bundleno = 11787 (0x2e0b), region = 64 }
0x2d2b   : > { %v2873_v9 = vpop.permute.xlu0 %2872 }
0x2d2c   : > { %2875 = vst.msk [vmem:[#allocation4] sm:$0xff] %vm533_vm3, %v2873_v9 }
0x2d33   : > { %v2885_v18 = vld [vmem:[#allocation4] sm:$0xff] }
0x2d34   : > { %3531 = vmatmul.mubr.msk.f32.vlgmr.msra.gmra.mrb[0].mxu0 %vm533_vm3, %v2885_v18 }
0x2e07   : > { %v2966_v19 = vpop.f32.mrb[0].mxu0 }
0x2e08   : > { %v2967_v20 = vadd.f32 %v3102_v59, %v2966_v19  ;;  %v3532_v61 = vpop.f32.mrb[1].mxu0 }
0x2e0a   : > { %2971 = vst.msk [vmem:[%s4414_s9] sm:$0xff] %vm2970_vm6, %v2967_v20 }
0x2e0b PF: > { %s19_s11 = sadd.s32 1, %s3892_s11   ;;  %s4415_s30 = smov %s3888_s10 }
0x2e0c   : > { %p16_p7 = scmp.ge.s32.totalorder %s19_s11, 4   ;;  %s4416_s10 = smov %s4418_s12 }
0x2e0e   :  { %18 = sbr.rel (!%p16_p7) target bundleno = 2 (0x2), region = 94 }

</bundles_post_ra>
